<compile_context>
chip_gen: v7x
topology: tpu7x:2x2x1
jax: 0.10.0
libtpu: 0.0.40
codegen_flags: <defaults>
</compile_context>

<pallas_src>
import jax
import jax.numpy as jnp
from jax import lax
from jax.experimental import pallas as pl
from jax.experimental.pallas import tpu as pltpu


# ------------------------------ fused Pallas kernel ---------------------------

def _lenet_kernel(x_ref, m1_ref, b1_ref, m2_ref, b2_ref,
                  fc1w_ref, fc1b_ref, fc2w_ref, fc2b_ref, fc3w_ref, fc3b_ref,
                  o_ref):
    """Entire LeNet forward on one VMEM-resident batch tile.

    x_ref: (BT, 32, 32) bf16, planar per sample (rows = width, lanes = height),
    with rows deinterleaved as [even widths (16) | odd widths (16)].
    """
    bf16 = jnp.bfloat16
    BT = x_ref.shape[0]

    def mm(a, b):
        # bf16 MXU operands, f32 accumulation.
        return jnp.dot(a, b, preferred_element_type=jnp.float32)

    # ---- hoisted loads: every weight/bias is read exactly once per grid step ----
    x = x_ref[...]                       # (BT, 32, 32) bf16
    m1 = m1_ref[...]                     # (160, 168)  bf16  K-stacked conv1 Toeplitz
    b1 = b1_ref[...]                     # (1, 168)    f32
    m2 = m2_ref[...]                     # (420, 160)  bf16  K-stacked conv2 Toeplitz
    b2 = b2_ref[...]                     # (1, 160)    f32
    fc1w = fc1w_ref[...]; fc1b = fc1b_ref[...]
    fc2w = fc2w_ref[...]; fc2b = fc2b_ref[...]
    fc3w = fc3w_ref[...]; fc3b = fc3b_ref[...]

    flat_rows = []
    for b in range(BT):                  # small static batch tile -> unrolled
        xb = x[b]                        # (32, 32) bf16, rows: [w even | w odd]

        # ---- conv1 (5x5, 1->6): one K-stacked matmul per output-row parity.
        #      dw-shifted slices are contiguous because the input rows are
        #      even/odd deinterleaved; lane order of each piece is the raw height.
        lhs_e = jnp.concatenate(                              # even output widths
            [xb[0:14], xb[16:30], xb[1:15], xb[17:31], xb[2:16]], axis=1)   # (14,160)
        lhs_o = jnp.concatenate(                              # odd output widths
            [xb[16:30], xb[1:15], xb[17:31], xb[2:16], xb[18:32]], axis=1)  # (14,160)
        # 2x2 width max-pool == elementwise max of the two parity halves.
        a1 = jnp.maximum(mm(lhs_e, m1), mm(lhs_o, m1))        # (14, 168) f32
        h1 = jnp.maximum(a1 + b1, 0.0)                        # bias + ReLU
        # 2x2 height max-pool: output columns are [even-h block | odd-h block].
        hp1 = jnp.maximum(h1[:, 0:84], h1[:, 84:168]).astype(bf16)          # (14, 84)

        # ---- conv2 (5x5, 6->16) + bias (NO ReLU, matching the reference).
        #      Rows of hp1 are in standard pooled-width order, so the dw slices
        #      are plain contiguous row windows -> one K=420 matmul.
        lhs2 = jnp.concatenate([hp1[0:10], hp1[1:11], hp1[2:12],
                                hp1[3:13], hp1[4:14]], axis=1)               # (10, 420)
        a2 = mm(lhs2, m2) + b2                                               # (10, 160) f32
        # 2x2 height max-pool via lane halves -> lanes are c*5 + pooled_h.
        hp2 = jnp.maximum(a2[:, 0:80], a2[:, 80:160])                        # (10, 80)

        # ---- 2x2 width max-pool + torch NCHW view(-1, 400) flatten.
        #      Static row-pair maxes + lane concat; permutation folded into fc1w.
        flat_rows.append(jnp.concatenate(
            [jnp.maximum(hp2[2 * i:2 * i + 1], hp2[2 * i + 1:2 * i + 2])
             for i in range(5)], axis=1))                                    # (1, 400)

    # ---- batched FC tail + log_softmax: one pass and ONE store per tile ----
    f = jnp.concatenate(flat_rows, axis=0).astype(bf16)                      # (BT, 400)
    f1 = jnp.maximum(mm(f, fc1w) + fc1b, 0.0)                                # (BT, 120)
    f2 = jnp.maximum(mm(f1.astype(bf16), fc2w) + fc2b, 0.0)                  # (BT, 84)
    f3 = mm(f2.astype(bf16), fc3w) + fc3b                                    # (BT, 7)
    z = f3 - jnp.max(f3, axis=-1, keepdims=True)
    z = z - jnp.log(jnp.sum(jnp.exp(z), axis=-1, keepdims=True))
    o_ref[...] = z.astype(o_ref.dtype)


# ------------------------- one-time parameter preparation ---------------------

def prepare_params(p):
    """Re-layout LeNet parameters into the fused kernel's operand set (run once)."""
    f32, bf16 = jnp.float32, jnp.bfloat16

    def conv_toeplitz_cat(w, h_in, h_out):
        # w: (Cout, Cin, 5, 5) -> (5*Cin*h_in, 2*Cout*(h_out//2)) with
        #   row  = dw*Cin*h_in + ci*h_in + i
        #   col  = par*Cout*hh + co*hh + j   (output height oh = 2*j + par)
        #   val  = w[co, ci, i - oh, dw]  for 0 <= i - oh < 5, else 0.
        cout, cin, kh, kw = w.shape
        d = jnp.arange(h_in)[None, :] - jnp.arange(h_out)[:, None]          # (h_out, h_in)
        valid = ((d >= 0) & (d < kh)).astype(f32)
        t = w[:, :, jnp.clip(d, 0, kh - 1), :]                              # (Cout,Cin,h_out,h_in,5)
        t = t * valid[None, None, :, :, None]
        t = jnp.transpose(t, (4, 1, 3, 0, 2))                               # (5,Cin,h_in,Cout,h_out)
        hh = h_out // 2
        t = t.reshape(kw * cin * h_in, cout, hh, 2)                         # oh = 2*j + par
        t = jnp.transpose(t, (0, 3, 1, 2))                                  # (K, par, Cout, hh)
        return t.reshape(kw * cin * h_in, 2 * cout * hh)

    # fc1: fold torch's NCHW view(-1, 400) flatten + our (pooled_w, c, pooled_h)
    # lane order into the weight matrix: row = ow*80 + c*5 + oh.
    fc1p = jnp.transpose(p["fc1_w"].astype(f32).reshape(120, 16, 5, 5),
                         (3, 1, 2, 0)).reshape(400, 120)

    return {
        "m1": conv_toeplitz_cat(p["conv1_w"].astype(f32), 32, 28).astype(bf16),  # (160, 168)
        "b1": jnp.tile(jnp.repeat(p["conv1_b"].astype(f32), 14), 2)[None, :],    # (1, 168)
        "m2": conv_toeplitz_cat(p["conv2_w"].astype(f32), 14, 10).astype(bf16),  # (420, 160)
        "b2": jnp.tile(jnp.repeat(p["conv2_b"].astype(f32), 5), 2)[None, :],     # (1, 160)
        "fc1_w": fc1p.astype(bf16),                                              # (400, 120)
        "fc1_b": p["fc1_b"].astype(f32)[None, :],                                # (1, 120)
        "fc2_w": p["fc2_w"].astype(f32).T.astype(bf16),                          # (120, 84)
        "fc2_b": p["fc2_b"].astype(f32)[None, :],                                # (1, 84)
        "fc3_w": p["fc3_w"].astype(f32).T.astype(bf16),                          # (84, 7)
        "fc3_b": p["fc3_b"].astype(f32)[None, :],                                # (1, 7)
    }


# ------------------------------- forward wrapper ------------------------------

def lenet_forward(x_nchw, prepped, block_b=8):
    """x_nchw: (B, 1, 32, 32) float32, prepped: output of prepare_params()."""
    B = x_nchw.shape[0]
    bt = min(B, block_b)
    n_blk = pl.cdiv(B, bt)
    b_pad = n_blk * bt

    # Planar layout (rows = width, lanes = height), rows deinterleaved
    # [even w | odd w] so the 2x2 width pool becomes an elementwise max of the
    # two conv1 half-matmuls.  Cast to bf16 once (halves input DMA, no in-kernel casts).
    xp = jnp.swapaxes(x_nchw, 2, 3)[:, 0]                                    # (B, 32, 32)
    xd = jnp.concatenate([xp[:, 0::2, :], xp[:, 1::2, :]], axis=1).astype(jnp.bfloat16)
    if b_pad != B:
        xd = jnp.pad(xd, ((0, b_pad - B), (0, 0), (0, 0)))

    w_args = (prepped["m1"], prepped["b1"], prepped["m2"], prepped["b2"],
              prepped["fc1_w"], prepped["fc1_b"], prepped["fc2_w"], prepped["fc2_b"],
              prepped["fc3_w"], prepped["fc3_b"])
    # Constant index maps -> weights stay VMEM-resident across batch tiles.
    w_specs = [pl.BlockSpec(a.shape, (lambda i, _nd=a.ndim: (0,) * _nd)) for a in w_args]

    out = pl.pallas_call(
        _lenet_kernel,
        out_shape=jax.ShapeDtypeStruct((b_pad, 7), jnp.float32),
        grid=(n_blk,),
        in_specs=[pl.BlockSpec((bt, 32, 32), lambda i: (i, 0, 0))] + w_specs,
        out_specs=pl.BlockSpec((bt, 7), lambda i: (i, 0)),
        compiler_params=pltpu.CompilerParams(dimension_semantics=("parallel",)),
    )(xd, *w_args)
    return out[:B]


# --------------------- deterministic params + pure-JAX reference --------------

def init_params(key):
    ks = jax.random.split(key, 10)
    def n(k, shape, scale):
        return (scale * jax.random.normal(k, shape)).astype(jnp.float32)
    return {
        "conv1_w": n(ks[0], (6, 1, 5, 5), 0.2),  "conv1_b": n(ks[1], (6,), 0.1),
        "conv2_w": n(ks[2], (16, 6, 5, 5), 0.1), "conv2_b": n(ks[3], (16,), 0.1),
        "fc1_w":   n(ks[4], (120, 400), 0.05),   "fc1_b":   n(ks[5], (120,), 0.05),
        "fc2_w":   n(ks[6], (84, 120), 0.05),    "fc2_b":   n(ks[7], (84,), 0.05),
        "fc3_w":   n(ks[8], (7, 84), 0.05),      "fc3_b":   n(ks[9], (7,), 0.05),
    }


def lenet_reference(x, p):
    dn = ("NCHW", "OIHW", "NCHW")
    y = lax.conv_general_dilated(x, p["conv1_w"], (1, 1), "VALID", dimension_numbers=dn)
    y = jnp.maximum(y + p["conv1_b"].reshape(1, 6, 1, 1), 0.0)
    y = lax.reduce_window(y, -jnp.inf, lax.max, (1, 1, 2, 2), (1, 1, 2, 2), "VALID")
    y = lax.conv_general_dilated(y, p["conv2_w"], (1, 1), "VALID", dimension_numbers=dn)
    y = y + p["conv2_b"].reshape(1, 16, 1, 1)
    y = lax.reduce_window(y, -jnp.inf, lax.max, (1, 1, 2, 2), (1, 1, 2, 2), "VALID")
    y = y.reshape(x.shape[0], 16 * 5 * 5)
    y = jnp.maximum(y @ p["fc1_w"].T + p["fc1_b"], 0.0)
    y = jnp.maximum(y @ p["fc2_w"].T + p["fc2_b"], 0.0)
    y = y @ p["fc3_w"].T + p["fc3_b"]
    return jax.nn.log_softmax(y, axis=1)


if __name__ == "__main__":
    key = jax.random.PRNGKey(0)
    kx, kp = jax.random.split(key)
    x = jax.random.normal(kx, (2, 1, 32, 32), jnp.float32)   # LeNet needs 32x32 for 16*5*5
    params = init_params(kp)
    prepped = prepare_params(params)                          # one-time weight re-layout

    fwd = jax.jit(lenet_forward)
    out = jax.block_until_ready(fwd(x, prepped))
    assert out.shape == (2, 7) and out.dtype == jnp.float32

    ref = jax.block_until_ready(lenet_reference(x, params))
    assert jnp.allclose(out, ref, atol=5e-2, rtol=5e-2), (out, ref)
    assert jnp.allclose(jnp.exp(out).sum(axis=1), 1.0, atol=1e-3)

    print("KERNEL_OK")
</pallas_src>

<mosaic_0001>
module attributes {stable_mosaic.version = 11 : i64} {
  func.func @_lenet_kernel(%arg0: i32, %arg1: memref<2x32x32xbf16, #tpu.memory_space<vmem>>, %arg2: memref<160x168xbf16, #tpu.memory_space<vmem>>, %arg3: memref<1x168xf32, #tpu.memory_space<vmem>>, %arg4: memref<420x160xbf16, #tpu.memory_space<vmem>>, %arg5: memref<1x160xf32, #tpu.memory_space<vmem>>, %arg6: memref<400x120xbf16, #tpu.memory_space<vmem>>, %arg7: memref<1x120xf32, #tpu.memory_space<vmem>>, %arg8: memref<120x84xbf16, #tpu.memory_space<vmem>>, %arg9: memref<1x84xf32, #tpu.memory_space<vmem>>, %arg10: memref<84x7xbf16, #tpu.memory_space<vmem>>, %arg11: memref<1x7xf32, #tpu.memory_space<vmem>>, %arg12: memref<2x7xf32, #tpu.memory_space<vmem>>) attributes {dimension_semantics = [#tpu.dimension_semantics<parallel>], iteration_bounds = array<i64: 1>, scalar_prefetch = 0 : i64, scratch_operands = 0 : i64, tpu.core_type = #tpu.core_type<tc>, window_params = [{transform_indices = @transform_0, window_bounds = array<i64: 2, 32, 32>}, {pipeline_mode = #tpu.pipeline_mode<synchronous>, transform_indices = @transform_1, window_bounds = array<i64: 160, 168>}, {pipeline_mode = #tpu.pipeline_mode<synchronous>, transform_indices = @transform_2, window_bounds = array<i64: 1, 168>}, {pipeline_mode = #tpu.pipeline_mode<synchronous>, transform_indices = @transform_3, window_bounds = array<i64: 420, 160>}, {pipeline_mode = #tpu.pipeline_mode<synchronous>, transform_indices = @transform_4, window_bounds = array<i64: 1, 160>}, {pipeline_mode = #tpu.pipeline_mode<synchronous>, transform_indices = @transform_5, window_bounds = array<i64: 400, 120>}, {pipeline_mode = #tpu.pipeline_mode<synchronous>, transform_indices = @transform_6, window_bounds = array<i64: 1, 120>}, {pipeline_mode = #tpu.pipeline_mode<synchronous>, transform_indices = @transform_7, window_bounds = array<i64: 120, 84>}, {pipeline_mode = #tpu.pipeline_mode<synchronous>, transform_indices = @transform_8, window_bounds = array<i64: 1, 84>}, {pipeline_mode = #tpu.pipeline_mode<synchronous>, transform_indices = @transform_9, window_bounds = array<i64: 84, 7>}, {pipeline_mode = #tpu.pipeline_mode<synchronous>, transform_indices = @transform_10, window_bounds = array<i64: 1, 7>}, {transform_indices = @transform_11, window_bounds = array<i64: 2, 7>}]} {
    %c0 = arith.constant 0 : index
    %c0_0 = arith.constant 0 : index
    %c0_1 = arith.constant 0 : index
    %0 = vector.load %arg1[%c0, %c0_0, %c0_1] : memref<2x32x32xbf16, #tpu.memory_space<vmem>>, vector<2x32x32xbf16>
    %c0_2 = arith.constant 0 : index
    %c0_3 = arith.constant 0 : index
    %1 = vector.load %arg2[%c0_2, %c0_3] : memref<160x168xbf16, #tpu.memory_space<vmem>>, vector<160x168xbf16>
    %c0_4 = arith.constant 0 : index
    %c0_5 = arith.constant 0 : index
    %2 = vector.load %arg3[%c0_4, %c0_5] : memref<1x168xf32, #tpu.memory_space<vmem>>, vector<1x168xf32>
    %c0_6 = arith.constant 0 : index
    %c0_7 = arith.constant 0 : index
    %3 = vector.load %arg4[%c0_6, %c0_7] : memref<420x160xbf16, #tpu.memory_space<vmem>>, vector<420x160xbf16>
    %c0_8 = arith.constant 0 : index
    %c0_9 = arith.constant 0 : index
    %4 = vector.load %arg5[%c0_8, %c0_9] : memref<1x160xf32, #tpu.memory_space<vmem>>, vector<1x160xf32>
    %c0_10 = arith.constant 0 : index
    %c0_11 = arith.constant 0 : index
    %5 = vector.load %arg6[%c0_10, %c0_11] : memref<400x120xbf16, #tpu.memory_space<vmem>>, vector<400x120xbf16>
    %c0_12 = arith.constant 0 : index
    %c0_13 = arith.constant 0 : index
    %6 = vector.load %arg7[%c0_12, %c0_13] : memref<1x120xf32, #tpu.memory_space<vmem>>, vector<1x120xf32>
    %c0_14 = arith.constant 0 : index
    %c0_15 = arith.constant 0 : index
    %7 = vector.load %arg8[%c0_14, %c0_15] : memref<120x84xbf16, #tpu.memory_space<vmem>>, vector<120x84xbf16>
    %c0_16 = arith.constant 0 : index
    %c0_17 = arith.constant 0 : index
    %8 = vector.load %arg9[%c0_16, %c0_17] : memref<1x84xf32, #tpu.memory_space<vmem>>, vector<1x84xf32>
    %c0_18 = arith.constant 0 : index
    %c0_19 = arith.constant 0 : index
    %9 = vector.load %arg10[%c0_18, %c0_19] : memref<84x7xbf16, #tpu.memory_space<vmem>>, vector<84x7xbf16>
    %c0_20 = arith.constant 0 : index
    %c0_21 = arith.constant 0 : index
    %10 = vector.load %arg11[%c0_20, %c0_21] : memref<1x7xf32, #tpu.memory_space<vmem>>, vector<1x7xf32>
    %11 = vector.extract_strided_slice %0 {offsets = [0, 0, 0], sizes = [1, 32, 32], strides = [1, 1, 1]} : vector<2x32x32xbf16> to vector<1x32x32xbf16>
    %12 = vector.shape_cast %11 : vector<1x32x32xbf16> to vector<32x32xbf16>
    %13 = vector.extract_strided_slice %12 {offsets = [0, 0], sizes = [14, 32], strides = [1, 1]} : vector<32x32xbf16> to vector<14x32xbf16>
    %14 = vector.extract_strided_slice %12 {offsets = [16, 0], sizes = [14, 32], strides = [1, 1]} : vector<32x32xbf16> to vector<14x32xbf16>
    %15 = vector.extract_strided_slice %12 {offsets = [1, 0], sizes = [14, 32], strides = [1, 1]} : vector<32x32xbf16> to vector<14x32xbf16>
    %16 = vector.extract_strided_slice %12 {offsets = [17, 0], sizes = [14, 32], strides = [1, 1]} : vector<32x32xbf16> to vector<14x32xbf16>
    %17 = vector.extract_strided_slice %12 {offsets = [2, 0], sizes = [14, 32], strides = [1, 1]} : vector<32x32xbf16> to vector<14x32xbf16>
    %18 = tpu.concatenate %13, %14, %15, %16, %17 in 1 : vector<14x32xbf16>, vector<14x32xbf16>, vector<14x32xbf16>, vector<14x32xbf16>, vector<14x32xbf16> -> vector<14x160xbf16>
    %19 = vector.extract_strided_slice %12 {offsets = [16, 0], sizes = [14, 32], strides = [1, 1]} : vector<32x32xbf16> to vector<14x32xbf16>
    %20 = vector.extract_strided_slice %12 {offsets = [1, 0], sizes = [14, 32], strides = [1, 1]} : vector<32x32xbf16> to vector<14x32xbf16>
    %21 = vector.extract_strided_slice %12 {offsets = [17, 0], sizes = [14, 32], strides = [1, 1]} : vector<32x32xbf16> to vector<14x32xbf16>
    %22 = vector.extract_strided_slice %12 {offsets = [2, 0], sizes = [14, 32], strides = [1, 1]} : vector<32x32xbf16> to vector<14x32xbf16>
    %23 = vector.extract_strided_slice %12 {offsets = [18, 0], sizes = [14, 32], strides = [1, 1]} : vector<32x32xbf16> to vector<14x32xbf16>
    %24 = tpu.concatenate %19, %20, %21, %22, %23 in 1 : vector<14x32xbf16>, vector<14x32xbf16>, vector<14x32xbf16>, vector<14x32xbf16>, vector<14x32xbf16> -> vector<14x160xbf16>
    %cst = arith.constant dense<0.000000e+00> : vector<14x168xf32>
    %25 = tpu.matmul %18, %1, %cst {dimension_numbers = #tpu.dot_dimension_numbers<[1], [0], [0], [1], [0, 0, 1, 1], [], []>} : vector<14x160xbf16>, vector<160x168xbf16>, vector<14x168xf32> -> vector<14x168xf32>
    %cst_22 = arith.constant dense<0.000000e+00> : vector<14x168xf32>
    %26 = tpu.matmul %24, %1, %cst_22 {dimension_numbers = #tpu.dot_dimension_numbers<[1], [0], [0], [1], [0, 0, 1, 1], [], []>} : vector<14x160xbf16>, vector<160x168xbf16>, vector<14x168xf32> -> vector<14x168xf32>
    %27 = arith.maximumf %25, %26 : vector<14x168xf32>
    %28 = vector.broadcast %2 : vector<1x168xf32> to vector<14x168xf32>
    %29 = arith.addf %27, %28 : vector<14x168xf32>
    %cst_23 = arith.constant 0.000000e+00 : f32
    %30 = vector.broadcast %cst_23 : f32 to vector<14x168xf32>
    %31 = arith.maximumf %29, %30 : vector<14x168xf32>
    %32 = vector.extract_strided_slice %31 {offsets = [0, 0], sizes = [14, 84], strides = [1, 1]} : vector<14x168xf32> to vector<14x84xf32>
    %33 = vector.extract_strided_slice %31 {offsets = [0, 84], sizes = [14, 84], strides = [1, 1]} : vector<14x168xf32> to vector<14x84xf32>
    %34 = arith.maximumf %32, %33 : vector<14x84xf32>
    %35 = arith.truncf %34 : vector<14x84xf32> to vector<14x84xbf16>
    %36 = vector.extract_strided_slice %35 {offsets = [0, 0], sizes = [10, 84], strides = [1, 1]} : vector<14x84xbf16> to vector<10x84xbf16>
    %37 = vector.extract_strided_slice %35 {offsets = [1, 0], sizes = [10, 84], strides = [1, 1]} : vector<14x84xbf16> to vector<10x84xbf16>
    %38 = vector.extract_strided_slice %35 {offsets = [2, 0], sizes = [10, 84], strides = [1, 1]} : vector<14x84xbf16> to vector<10x84xbf16>
    %39 = vector.extract_strided_slice %35 {offsets = [3, 0], sizes = [10, 84], strides = [1, 1]} : vector<14x84xbf16> to vector<10x84xbf16>
    %40 = vector.extract_strided_slice %35 {offsets = [4, 0], sizes = [10, 84], strides = [1, 1]} : vector<14x84xbf16> to vector<10x84xbf16>
    %41 = tpu.concatenate %36, %37, %38, %39, %40 in 1 : vector<10x84xbf16>, vector<10x84xbf16>, vector<10x84xbf16>, vector<10x84xbf16>, vector<10x84xbf16> -> vector<10x420xbf16>
    %cst_24 = arith.constant dense<0.000000e+00> : vector<10x160xf32>
    %42 = tpu.matmul %41, %3, %cst_24 {dimension_numbers = #tpu.dot_dimension_numbers<[1], [0], [0], [1], [0, 0, 1, 1], [], []>} : vector<10x420xbf16>, vector<420x160xbf16>, vector<10x160xf32> -> vector<10x160xf32>
    %43 = vector.broadcast %4 : vector<1x160xf32> to vector<10x160xf32>
    %44 = arith.addf %42, %43 : vector<10x160xf32>
    %45 = vector.extract_strided_slice %44 {offsets = [0, 0], sizes = [10, 80], strides = [1, 1]} : vector<10x160xf32> to vector<10x80xf32>
    %46 = vector.extract_strided_slice %44 {offsets = [0, 80], sizes = [10, 80], strides = [1, 1]} : vector<10x160xf32> to vector<10x80xf32>
    %47 = arith.maximumf %45, %46 : vector<10x80xf32>
    %48 = vector.extract_strided_slice %47 {offsets = [0, 0], sizes = [1, 80], strides = [1, 1]} : vector<10x80xf32> to vector<1x80xf32>
    %49 = vector.extract_strided_slice %47 {offsets = [1, 0], sizes = [1, 80], strides = [1, 1]} : vector<10x80xf32> to vector<1x80xf32>
    %50 = arith.maximumf %48, %49 : vector<1x80xf32>
    %51 = vector.extract_strided_slice %47 {offsets = [2, 0], sizes = [1, 80], strides = [1, 1]} : vector<10x80xf32> to vector<1x80xf32>
    %52 = vector.extract_strided_slice %47 {offsets = [3, 0], sizes = [1, 80], strides = [1, 1]} : vector<10x80xf32> to vector<1x80xf32>
    %53 = arith.maximumf %51, %52 : vector<1x80xf32>
    %54 = vector.extract_strided_slice %47 {offsets = [4, 0], sizes = [1, 80], strides = [1, 1]} : vector<10x80xf32> to vector<1x80xf32>
    %55 = vector.extract_strided_slice %47 {offsets = [5, 0], sizes = [1, 80], strides = [1, 1]} : vector<10x80xf32> to vector<1x80xf32>
    %56 = arith.maximumf %54, %55 : vector<1x80xf32>
    %57 = vector.extract_strided_slice %47 {offsets = [6, 0], sizes = [1, 80], strides = [1, 1]} : vector<10x80xf32> to vector<1x80xf32>
    %58 = vector.extract_strided_slice %47 {offsets = [7, 0], sizes = [1, 80], strides = [1, 1]} : vector<10x80xf32> to vector<1x80xf32>
    %59 = arith.maximumf %57, %58 : vector<1x80xf32>
    %60 = vector.extract_strided_slice %47 {offsets = [8, 0], sizes = [1, 80], strides = [1, 1]} : vector<10x80xf32> to vector<1x80xf32>
    %61 = vector.extract_strided_slice %47 {offsets = [9, 0], sizes = [1, 80], strides = [1, 1]} : vector<10x80xf32> to vector<1x80xf32>
    %62 = arith.maximumf %60, %61 : vector<1x80xf32>
    %63 = tpu.concatenate %50, %53, %56, %59, %62 in 1 : vector<1x80xf32>, vector<1x80xf32>, vector<1x80xf32>, vector<1x80xf32>, vector<1x80xf32> -> vector<1x400xf32>
    %64 = vector.extract_strided_slice %0 {offsets = [1, 0, 0], sizes = [1, 32, 32], strides = [1, 1, 1]} : vector<2x32x32xbf16> to vector<1x32x32xbf16>
    %65 = vector.shape_cast %64 : vector<1x32x32xbf16> to vector<32x32xbf16>
    %66 = vector.extract_strided_slice %65 {offsets = [0, 0], sizes = [14, 32], strides = [1, 1]} : vector<32x32xbf16> to vector<14x32xbf16>
    %67 = vector.extract_strided_slice %65 {offsets = [16, 0], sizes = [14, 32], strides = [1, 1]} : vector<32x32xbf16> to vector<14x32xbf16>
    %68 = vector.extract_strided_slice %65 {offsets = [1, 0], sizes = [14, 32], strides = [1, 1]} : vector<32x32xbf16> to vector<14x32xbf16>
    %69 = vector.extract_strided_slice %65 {offsets = [17, 0], sizes = [14, 32], strides = [1, 1]} : vector<32x32xbf16> to vector<14x32xbf16>
    %70 = vector.extract_strided_slice %65 {offsets = [2, 0], sizes = [14, 32], strides = [1, 1]} : vector<32x32xbf16> to vector<14x32xbf16>
    %71 = tpu.concatenate %66, %67, %68, %69, %70 in 1 : vector<14x32xbf16>, vector<14x32xbf16>, vector<14x32xbf16>, vector<14x32xbf16>, vector<14x32xbf16> -> vector<14x160xbf16>
    %72 = vector.extract_strided_slice %65 {offsets = [16, 0], sizes = [14, 32], strides = [1, 1]} : vector<32x32xbf16> to vector<14x32xbf16>
    %73 = vector.extract_strided_slice %65 {offsets = [1, 0], sizes = [14, 32], strides = [1, 1]} : vector<32x32xbf16> to vector<14x32xbf16>
    %74 = vector.extract_strided_slice %65 {offsets = [17, 0], sizes = [14, 32], strides = [1, 1]} : vector<32x32xbf16> to vector<14x32xbf16>
    %75 = vector.extract_strided_slice %65 {offsets = [2, 0], sizes = [14, 32], strides = [1, 1]} : vector<32x32xbf16> to vector<14x32xbf16>
    %76 = vector.extract_strided_slice %65 {offsets = [18, 0], sizes = [14, 32], strides = [1, 1]} : vector<32x32xbf16> to vector<14x32xbf16>
    %77 = tpu.concatenate %72, %73, %74, %75, %76 in 1 : vector<14x32xbf16>, vector<14x32xbf16>, vector<14x32xbf16>, vector<14x32xbf16>, vector<14x32xbf16> -> vector<14x160xbf16>
    %cst_25 = arith.constant dense<0.000000e+00> : vector<14x168xf32>
    %78 = tpu.matmul %71, %1, %cst_25 {dimension_numbers = #tpu.dot_dimension_numbers<[1], [0], [0], [1], [0, 0, 1, 1], [], []>} : vector<14x160xbf16>, vector<160x168xbf16>, vector<14x168xf32> -> vector<14x168xf32>
    %cst_26 = arith.constant dense<0.000000e+00> : vector<14x168xf32>
    %79 = tpu.matmul %77, %1, %cst_26 {dimension_numbers = #tpu.dot_dimension_numbers<[1], [0], [0], [1], [0, 0, 1, 1], [], []>} : vector<14x160xbf16>, vector<160x168xbf16>, vector<14x168xf32> -> vector<14x168xf32>
    %80 = arith.maximumf %78, %79 : vector<14x168xf32>
    %81 = vector.broadcast %2 : vector<1x168xf32> to vector<14x168xf32>
    %82 = arith.addf %80, %81 : vector<14x168xf32>
    %cst_27 = arith.constant 0.000000e+00 : f32
    %83 = vector.broadcast %cst_27 : f32 to vector<14x168xf32>
    %84 = arith.maximumf %82, %83 : vector<14x168xf32>
    %85 = vector.extract_strided_slice %84 {offsets = [0, 0], sizes = [14, 84], strides = [1, 1]} : vector<14x168xf32> to vector<14x84xf32>
    %86 = vector.extract_strided_slice %84 {offsets = [0, 84], sizes = [14, 84], strides = [1, 1]} : vector<14x168xf32> to vector<14x84xf32>
    %87 = arith.maximumf %85, %86 : vector<14x84xf32>
    %88 = arith.truncf %87 : vector<14x84xf32> to vector<14x84xbf16>
    %89 = vector.extract_strided_slice %88 {offsets = [0, 0], sizes = [10, 84], strides = [1, 1]} : vector<14x84xbf16> to vector<10x84xbf16>
    %90 = vector.extract_strided_slice %88 {offsets = [1, 0], sizes = [10, 84], strides = [1, 1]} : vector<14x84xbf16> to vector<10x84xbf16>
    %91 = vector.extract_strided_slice %88 {offsets = [2, 0], sizes = [10, 84], strides = [1, 1]} : vector<14x84xbf16> to vector<10x84xbf16>
    %92 = vector.extract_strided_slice %88 {offsets = [3, 0], sizes = [10, 84], strides = [1, 1]} : vector<14x84xbf16> to vector<10x84xbf16>
    %93 = vector.extract_strided_slice %88 {offsets = [4, 0], sizes = [10, 84], strides = [1, 1]} : vector<14x84xbf16> to vector<10x84xbf16>
    %94 = tpu.concatenate %89, %90, %91, %92, %93 in 1 : vector<10x84xbf16>, vector<10x84xbf16>, vector<10x84xbf16>, vector<10x84xbf16>, vector<10x84xbf16> -> vector<10x420xbf16>
    %cst_28 = arith.constant dense<0.000000e+00> : vector<10x160xf32>
    %95 = tpu.matmul %94, %3, %cst_28 {dimension_numbers = #tpu.dot_dimension_numbers<[1], [0], [0], [1], [0, 0, 1, 1], [], []>} : vector<10x420xbf16>, vector<420x160xbf16>, vector<10x160xf32> -> vector<10x160xf32>
    %96 = vector.broadcast %4 : vector<1x160xf32> to vector<10x160xf32>
    %97 = arith.addf %95, %96 : vector<10x160xf32>
    %98 = vector.extract_strided_slice %97 {offsets = [0, 0], sizes = [10, 80], strides = [1, 1]} : vector<10x160xf32> to vector<10x80xf32>
    %99 = vector.extract_strided_slice %97 {offsets = [0, 80], sizes = [10, 80], strides = [1, 1]} : vector<10x160xf32> to vector<10x80xf32>
    %100 = arith.maximumf %98, %99 : vector<10x80xf32>
    %101 = vector.extract_strided_slice %100 {offsets = [0, 0], sizes = [1, 80], strides = [1, 1]} : vector<10x80xf32> to vector<1x80xf32>
    %102 = vector.extract_strided_slice %100 {offsets = [1, 0], sizes = [1, 80], strides = [1, 1]} : vector<10x80xf32> to vector<1x80xf32>
    %103 = arith.maximumf %101, %102 : vector<1x80xf32>
    %104 = vector.extract_strided_slice %100 {offsets = [2, 0], sizes = [1, 80], strides = [1, 1]} : vector<10x80xf32> to vector<1x80xf32>
    %105 = vector.extract_strided_slice %100 {offsets = [3, 0], sizes = [1, 80], strides = [1, 1]} : vector<10x80xf32> to vector<1x80xf32>
    %106 = arith.maximumf %104, %105 : vector<1x80xf32>
    %107 = vector.extract_strided_slice %100 {offsets = [4, 0], sizes = [1, 80], strides = [1, 1]} : vector<10x80xf32> to vector<1x80xf32>
    %108 = vector.extract_strided_slice %100 {offsets = [5, 0], sizes = [1, 80], strides = [1, 1]} : vector<10x80xf32> to vector<1x80xf32>
    %109 = arith.maximumf %107, %108 : vector<1x80xf32>
    %110 = vector.extract_strided_slice %100 {offsets = [6, 0], sizes = [1, 80], strides = [1, 1]} : vector<10x80xf32> to vector<1x80xf32>
    %111 = vector.extract_strided_slice %100 {offsets = [7, 0], sizes = [1, 80], strides = [1, 1]} : vector<10x80xf32> to vector<1x80xf32>
    %112 = arith.maximumf %110, %111 : vector<1x80xf32>
    %113 = vector.extract_strided_slice %100 {offsets = [8, 0], sizes = [1, 80], strides = [1, 1]} : vector<10x80xf32> to vector<1x80xf32>
    %114 = vector.extract_strided_slice %100 {offsets = [9, 0], sizes = [1, 80], strides = [1, 1]} : vector<10x80xf32> to vector<1x80xf32>
    %115 = arith.maximumf %113, %114 : vector<1x80xf32>
    %116 = tpu.concatenate %103, %106, %109, %112, %115 in 1 : vector<1x80xf32>, vector<1x80xf32>, vector<1x80xf32>, vector<1x80xf32>, vector<1x80xf32> -> vector<1x400xf32>
    %117 = tpu.concatenate %63, %116 in 0 : vector<1x400xf32>, vector<1x400xf32> -> vector<2x400xf32>
    %118 = arith.truncf %117 : vector<2x400xf32> to vector<2x400xbf16>
    %cst_29 = arith.constant dense<0.000000e+00> : vector<2x120xf32>
    %119 = tpu.matmul %118, %5, %cst_29 {dimension_numbers = #tpu.dot_dimension_numbers<[1], [0], [0], [1], [0, 0, 1, 1], [], []>} : vector<2x400xbf16>, vector<400x120xbf16>, vector<2x120xf32> -> vector<2x120xf32>
    %120 = vector.broadcast %6 : vector<1x120xf32> to vector<2x120xf32>
    %121 = arith.addf %119, %120 : vector<2x120xf32>
    %cst_30 = arith.constant 0.000000e+00 : f32
    %122 = vector.broadcast %cst_30 : f32 to vector<2x120xf32>
    %123 = arith.maximumf %121, %122 : vector<2x120xf32>
    %124 = arith.truncf %123 : vector<2x120xf32> to vector<2x120xbf16>
    %cst_31 = arith.constant dense<0.000000e+00> : vector<2x84xf32>
    %125 = tpu.matmul %124, %7, %cst_31 {dimension_numbers = #tpu.dot_dimension_numbers<[1], [0], [0], [1], [0, 0, 1, 1], [], []>} : vector<2x120xbf16>, vector<120x84xbf16>, vector<2x84xf32> -> vector<2x84xf32>
    %126 = vector.broadcast %8 : vector<1x84xf32> to vector<2x84xf32>
    %127 = arith.addf %125, %126 : vector<2x84xf32>
    %cst_32 = arith.constant 0.000000e+00 : f32
    %128 = vector.broadcast %cst_32 : f32 to vector<2x84xf32>
    %129 = arith.maximumf %127, %128 : vector<2x84xf32>
    %130 = arith.truncf %129 : vector<2x84xf32> to vector<2x84xbf16>
    %cst_33 = arith.constant dense<0.000000e+00> : vector<2x7xf32>
    %131 = tpu.matmul %130, %9, %cst_33 {dimension_numbers = #tpu.dot_dimension_numbers<[1], [0], [0], [1], [0, 0, 1, 1], [], []>} : vector<2x84xbf16>, vector<84x7xbf16>, vector<2x7xf32> -> vector<2x7xf32>
    %132 = vector.broadcast %10 : vector<1x7xf32> to vector<2x7xf32>
    %133 = arith.addf %131, %132 : vector<2x7xf32>
    %cst_34 = arith.constant dense<0xFF800000> : vector<2xf32>
    %134 = vector.multi_reduction <maximumf>, %133, %cst_34 [1] : vector<2x7xf32> to vector<2xf32>
    %135 = vector.shape_cast %134 : vector<2xf32> to vector<2x1xf32>
    %136 = vector.broadcast %135 : vector<2x1xf32> to vector<2x7xf32>
    %137 = arith.subf %133, %136 : vector<2x7xf32>
    %138 = math.exp %137 : vector<2x7xf32>
    %cst_35 = arith.constant dense<0.000000e+00> : vector<2xf32>
    %139 = vector.multi_reduction <add>, %138, %cst_35 [1] : vector<2x7xf32> to vector<2xf32>
    %140 = vector.shape_cast %139 : vector<2xf32> to vector<2x1xf32>
    %141 = math.log %140 : vector<2x1xf32>
    %142 = vector.broadcast %141 : vector<2x1xf32> to vector<2x7xf32>
    %143 = arith.subf %137, %142 : vector<2x7xf32>
    %c0_36 = arith.constant 0 : index
    %c0_37 = arith.constant 0 : index
    %144 = vector.load %arg12[%c0_36, %c0_37] : memref<2x7xf32, #tpu.memory_space<vmem>>, vector<2x7xf32>
    tpu.vector_store %arg12[%c0_36, %c0_37], %143 {strides = array<i32>} : memref<2x7xf32, #tpu.memory_space<vmem>>, vector<2x7xf32>,
    return
  }
  func.func @transform_0(%arg0: i32) -> (i32, i32, i32) {
    %c0_i32 = arith.constant 0 : i32
    %c0_i32_0 = arith.constant 0 : i32
    %c0_i32_1 = arith.constant 0 : i32
    return %arg0, %c0_i32, %c0_i32_0 : i32, i32, i32
  }
  func.func @transform_1(%arg0: i32) -> (i32, i32) {
    %c0_i32 = arith.constant 0 : i32
    %c0_i32_0 = arith.constant 0 : i32
    %c0_i32_1 = arith.constant 0 : i32
    return %c0_i32, %c0_i32_0 : i32, i32
  }
  func.func @transform_2(%arg0: i32) -> (i32, i32) {
    %c0_i32 = arith.constant 0 : i32
    %c0_i32_0 = arith.constant 0 : i32
    %c0_i32_1 = arith.constant 0 : i32
    return %c0_i32, %c0_i32_0 : i32, i32
  }
  func.func @transform_3(%arg0: i32) -> (i32, i32) {
    %c0_i32 = arith.constant 0 : i32
    %c0_i32_0 = arith.constant 0 : i32
    %c0_i32_1 = arith.constant 0 : i32
    return %c0_i32, %c0_i32_0 : i32, i32
  }
  func.func @transform_4(%arg0: i32) -> (i32, i32) {
    %c0_i32 = arith.constant 0 : i32
    %c0_i32_0 = arith.constant 0 : i32
    %c0_i32_1 = arith.constant 0 : i32
    return %c0_i32, %c0_i32_0 : i32, i32
  }
  func.func @transform_5(%arg0: i32) -> (i32, i32) {
    %c0_i32 = arith.constant 0 : i32
    %c0_i32_0 = arith.constant 0 : i32
    %c0_i32_1 = arith.constant 0 : i32
    return %c0_i32, %c0_i32_0 : i32, i32
  }
  func.func @transform_6(%arg0: i32) -> (i32, i32) {
    %c0_i32 = arith.constant 0 : i32
    %c0_i32_0 = arith.constant 0 : i32
    %c0_i32_1 = arith.constant 0 : i32
    return %c0_i32, %c0_i32_0 : i32, i32
  }
  func.func @transform_7(%arg0: i32) -> (i32, i32) {
    %c0_i32 = arith.constant 0 : i32
    %c0_i32_0 = arith.constant 0 : i32
    %c0_i32_1 = arith.constant 0 : i32
    return %c0_i32, %c0_i32_0 : i32, i32
  }
  func.func @transform_8(%arg0: i32) -> (i32, i32) {
    %c0_i32 = arith.constant 0 : i32
    %c0_i32_0 = arith.constant 0 : i32
    %c0_i32_1 = arith.constant 0 : i32
    return %c0_i32, %c0_i32_0 : i32, i32
  }
  func.func @transform_9(%arg0: i32) -> (i32, i32) {
    %c0_i32 = arith.constant 0 : i32
    %c0_i32_0 = arith.constant 0 : i32
    %c0_i32_1 = arith.constant 0 : i32
    return %c0_i32, %c0_i32_0 : i32, i32
  }
  func.func @transform_10(%arg0: i32) -> (i32, i32) {
    %c0_i32 = arith.constant 0 : i32
    %c0_i32_0 = arith.constant 0 : i32
    %c0_i32_1 = arith.constant 0 : i32
    return %c0_i32, %c0_i32_0 : i32, i32
  }
  func.func @transform_11(%arg0: i32) -> (i32, i32) {
    %c0_i32 = arith.constant 0 : i32
    %c0_i32_0 = arith.constant 0 : i32
    return %arg0, %c0_i32 : i32, i32
  }
}

</mosaic_0001>

<bundles_post_ra>
// kernel: lenet_forward.1
= control target key start
LH: loop header
LB: loop body
LE: loop exit
PB: predicated region body
PF: predicated region fallthrough
CT: control target
= control target key end

     0   :  { %s2233_s25 = smov 96   ;;  %s2234_s12 = smov 32   ;;  %vm233_vm0 = vcmask 261120   ;;  %s2973_s0 = inlined_call_operand.vmem [shape: bf16[2,32,32], index: 0, kind: input, shape index: {}]   ;;  %s2974_s1 = inlined_call_operand.vmem [shape: bf16[160,168], index: 1, kind: input, shape index: {}]   ;;  %s2975_s2 = inlined_call_operand.vmem [shape: f32[1,168], index: 2, kind: input, shape index: {}]   ;;  %s2976_s3 = inlined_call_operand.vmem [shape: bf16[420,160], index: 3, kind: input, shape index: {}]   ;;  %s2977_s4 = inlined_call_operand.vmem [shape: f32[1,160], index: 4, kind: input, shape index: {}]   ;;  %s2978_s5 = inlined_call_operand.vmem [shape: bf16[400,120], index: 5, kind: input, shape index: {}]   ;;  %s2979_s6 = inlined_call_operand.vmem [shape: f32[1,120], index: 6, kind: input, shape index: {}]   ;;  %s2980_s7 = inlined_call_operand.vmem [shape: bf16[120,84], index: 7, kind: input, shape index: {}]   ;;  %s2981_s8 = inlined_call_operand.vmem [shape: f32[1,84], index: 8, kind: input, shape index: {}]   ;;  %s2982_s9 = inlined_call_operand.vmem [shape: bf16[84,7], index: 9, kind: input, shape index: {}]   ;;  %s2983_s10 = inlined_call_operand.vmem [shape: f32[1,7], index: 10, kind: input, shape index: {}]   ;;  %s2984_s11 = inlined_call_operand.hbm [shape: f32[2,7], index: 11, kind: output, shape index: {}]  }
   0x1   :  { %v2310_v0 = vld [vmem:[%s2973_s0] sm:$0xff]   ;;  %v2315_v1 = vld [vmem:[%s2973_s0 + $0x8] sm:$0xff]   ;;  %v2325_v7 = vld [vmem:[%s2973_s0 + $0x18] sm:$0xff]   ;;  %s2235_s17 = smov 64  }
   0x2   :  { %v215_v2 = vshrl.u32 %v2310_v0, 16  ;;  %v217_v3 = vshll.u32 %v2310_v0, 16  ;;  %v232_v4 = vrot.slane %v2310_v0, 1  ;;  %v224_v5 = vshrl.u32 %v2315_v1, 16  ;;  %v2330_v8 = vld [vmem:[%s2973_s0 + $0x10] sm:$0xff]  }
   0x3   :  { %v226_v6 = vshll.u32 %v2315_v1, 16  ;;  %v964_v11 = vshll.u32 %v2330_v8, 16  ;;  %v971_v13 = vshrl.u32 %v2325_v7, 16  ;;  %v973_v14 = vshll.u32 %v2325_v7, 16  ;;  %v2339_v15 = vld [vmem:[%s2974_s1 + $0x4] ss:$8 sps:$4 sm:$0xff]  }
   0x4   :  { %v219_v9 = vrot.slane %v217_v3, 1  ;;  %247 = vrot.lane.b32.xlu1 %v232_v4, %s2233_s25  ;;  %v2344_v16 = vld [vmem:[%s2974_s1] ss:$8 sps:$4 sm:$0xff]   ;;  %v2349_v17 = vld [vmem:[%s2974_s1 + $0x14] ss:$8 sps:$4 sm:$0xff]   ;;  %v962_v19 = vshrl.u32 %v2330_v8, 16  ;;  %406 = vmatprep.subr.bf16.mxu1 %v2339_v15 }
   0x5   :  { %v228_v10 = vrot.slane %v226_v6, 1  ;;  %v966_v20 = vrot.slane %v964_v11, 1  ;;  %v975_v21 = vrot.slane %v973_v14, 1  ;;  %360 = vmatprep.subr.bf16.mxu0 %v2339_v15  ;;  %v249_v22 = vrot.slane %v2315_v1, 1  ;;  %407 = vmatpush1.bf16.msra.mxu1 %v2344_v16  ;;  %v2362_v24 = vld [vmem:[%s2974_s1 + $0x10] ss:$8 sps:$4 sm:$0xff]  }
   0x6   :  { %v220_v12 = vor.u32 %v219_v9, %v215_v2  ;;  %361 = vmatpush1.bf16.msra.mxu0 %v2344_v16  ;;  %408 = vmatprep.subr.bf16.mxu1 %v2349_v17  ;;  %v2369_v25 = vld [vmem:[%s2974_s1 + $0x24] ss:$8 sps:$4 sm:$0xff]   ;;  %v2380_v27 = vld [vmem:[%s2974_s1 + $0x20] ss:$8 sps:$4 sm:$0xff]   ;;  %v2387_v28 = vld [vmem:[%s2974_s1 + $0x34] ss:$8 sps:$4 sm:$0xff]  }
   0x7   :  { %v229_v18 = vor.u32 %v228_v10, %v224_v5  ;;  %v976_v23 = vor.u32 %v975_v21, %v971_v13  ;;  %362 = vmatprep.subr.bf16.mxu0 %v2349_v17  ;;  %v967_v26 = vor.u32 %v966_v20, %v962_v19  ;;  %1790 = vmatprep.mubr.msk.bf16.mxu1 %vm233_vm0, %v249_v22  ;;  %v979_v29 = vrot.slane %v2330_v8, 1  ;;  %v2397_v30 = vld [vmem:[%s2974_s1 + $0x30] ss:$8 sps:$4 sm:$0xff]   ;;  %v2404_v31 = vld [vmem:[%s2974_s1 + $0x44] ss:$8 sps:$4 sm:$0xff]  }
   0x8   :  { %243 = vrot.lane.b32.xlu0 %v220_v12, %s2234_s12  ;;  %959 = vrot.lane.b32.xlu1 %v2325_v7, %s2234_s12  ;;  %v2414_v32 = vld [vmem:[%s2974_s1 + $0x40] ss:$8 sps:$4 sm:$0xff]   ;;  %v2419_v33 = vld [vmem:[%s2974_s1 + $0x54] ss:$8 sps:$4 sm:$0xff]  }
   0x9   :  { %1789 = vmatprep.mubr.msk.bf16.mxu0 %vm233_vm0, %v232_v4  ;;  %409 = vmatpush1.bf16.msra.mxu1 %v2362_v24  ;;  %v2431_v34 = vld [vmem:[%s2974_s1 + $0x50] ss:$8 sps:$4 sm:$0xff]   ;;  %v2436_v35 = vld [vmem:[%s2974_s1 + $0x64] ss:$8 sps:$4 sm:$0xff]   ;;  %v2446_v36 = vld [vmem:[%s2974_s1 + $0x60] ss:$8 sps:$4 sm:$0xff]  }
   0xa   :  { %363 = vmatpush1.bf16.msra.mxu0 %v2362_v24  ;;  %410 = vmatprep.subr.bf16.mxu1 %v2369_v25  ;;  %v2451_v37 = vld [vmem:[%s2974_s1 + $0x74] ss:$8 sps:$4 sm:$0xff]   ;;  %v2460_v38 = vld [vmem:[%s2974_s1 + $0x70] ss:$8 sps:$4 sm:$0xff]   ;;  %v2465_v39 = vld [vmem:[%s2974_s1 + $0x84] ss:$8 sps:$4 sm:$0xff]  }
   0xb   :  { %364 = vmatprep.subr.bf16.mxu0 %v2369_v25  ;;  %v2474_v40 = vld [vmem:[%s2974_s1 + $0x80] ss:$8 sps:$4 sm:$0xff]   ;;  %v2479_v41 = vld [vmem:[%s2974_s1 + $0x94] ss:$8 sps:$4 sm:$0xff]   ;;  %v2488_v42 = vld [vmem:[%s2974_s1 + $0x90] ss:$8 sps:$4 sm:$0xff]  }
   0xc   :  { %245 = vrot.lane.b32.xlu0 %v229_v18, %s2235_s17  ;;  %977 = vrot.lane.b32.xlu1 %v976_v23, %s2233_s25 }
   0xd   :  { %411 = vmatpush1.bf16.msra.mxu1 %v2380_v27 }
   0xe   :  { %365 = vmatpush1.bf16.msra.mxu0 %v2380_v27  ;;  %412 = vmatprep.subr.bf16.mxu1 %v2387_v28 }
   0xf   :  { %366 = vmatprep.subr.bf16.mxu0 %v2387_v28 }
  0x10   :  { %968 = vrot.lane.b32.xlu0 %v967_v26, %s2235_s17  ;;  %989 = vrot.lane.b32.xlu1 %v976_v23, %s2235_s17 }
  0x11   :  { %413 = vmatpush1.bf16.msra.mxu1 %v2397_v30 }
  0x12   :  { %367 = vmatpush1.bf16.msra.mxu0 %v2397_v30  ;;  %414 = vmatprep.subr.bf16.mxu1 %v2404_v31 }
  0x13   :  { %368 = vmatprep.subr.bf16.mxu0 %v2404_v31 }
  0x14   :  { %987 = vrot.lane.b32.xlu0 %v967_v26, %s2234_s12  ;;  %991 = vrot.lane.b32.xlu1 %v979_v29, %s2233_s25 }
  0x15   :  { %415 = vmatpush1.bf16.msra.mxu1 %v2414_v32 }
  0x16   :  { %369 = vmatpush1.bf16.msra.mxu0 %v2414_v32  ;;  %416 = vmatprep.subr.bf16.mxu1 %v2419_v33 }
  0x17   :  { %370 = vmatprep.subr.bf16.mxu0 %v2419_v33 }
  0x18   :  { %212 = vrot.lane.b32.xlu0 %v2315_v1, %s2234_s12  ;;  %230 = vrot.lane.b32.xlu1 %v229_v18, %s2233_s25 }
  0x19   :  { %417 = vmatpush1.bf16.msra.mxu1 %v2431_v34 }
  0x1a   :  { %371 = vmatpush1.bf16.msra.mxu0 %v2431_v34  ;;  %418 = vmatprep.subr.bf16.mxu1 %v2436_v35 }
  0x1b   :  { %372 = vmatprep.subr.bf16.mxu0 %v2436_v35 }
  0x1c   :  { %221 = vrot.lane.b32.xlu0 %v220_v12, %s2235_s17 }
  0x1d   :  { %419 = vmatpush1.bf16.msra.mxu1 %v2446_v36 }
  0x1e   :  { %373 = vmatpush1.bf16.msra.mxu0 %v2446_v36  ;;  %420 = vmatprep.subr.bf16.mxu1 %v2451_v37 }
  0x1f   :  { %374 = vmatprep.subr.bf16.mxu0 %v2451_v37 }
  0x21   :  { %421 = vmatpush1.bf16.msra.mxu1 %v2460_v38 }
  0x22   :  { %375 = vmatpush1.bf16.msra.mxu0 %v2460_v38  ;;  %422 = vmatprep.subr.bf16.mxu1 %v2465_v39 }
  0x23   :  { %376 = vmatprep.subr.bf16.mxu0 %v2465_v39 }
  0x25   :  { %423 = vmatpush1.bf16.msra.mxu1 %v2474_v40 }
  0x26   :  { %377 = vmatpush1.bf16.msra.mxu0 %v2474_v40  ;;  %424 = vmatprep.subr.bf16.mxu1 %v2479_v41 }
  0x27   :  { %378 = vmatprep.subr.bf16.mxu0 %v2479_v41 }
  0x29   :  { %425 = vmatpush1.bf16.msra.mxu1 %v2488_v42 }
  0x2a   :  { %379 = vmatpush1.bf16.msra.mxu0 %v2488_v42  ;;  %1004 = vmatprep.subr.bf16.mxu1 %v2339_v15 }
  0x2b   :  { %16 = vsyncpa [#allocation3], 0  ;;  %vm236_vm1 = vcmask 523264   ;;  %vm239_vm2 = vcmask 785408   ;;  %v993_v3 = vrot.slane %v2325_v7, 1  ;;  %v454_v20 = vlaneseq  ;;  %s2237_s19 = smov 84  }
  0x2c   :  { %vm484_vm3 = vcmask 359424   ;;  %s2238_s20 = smov 124   ;;  %s2239_s21 = smov 40   ;;  %vm517_vm4 = vcmask 326656   ;;  %vm520_vm5 = vcmask 1014784   ;;  %vm513_vm6 = vcmask 687104  }
  0x2d   :  { %v2557_v21 = vshrl.u32 %v454_v20, 7  ;;  %s2240_s22 = smov 80   ;;  %vm804_vm7 = vcmask 293888   ;;  %vm807_vm8 = vcmask 1041408   ;;  %vm524_vm9 = vcmask 654336   ;;  %s2243_s16 = smov 112  }
  0x2e   :  { %vm912_vm10 = vcmask 392192   ;;  %vm946_vm11 = vcmask 916480   ;;  %vm1302_vm12 = vcmask 1040384   ;;  %vm1467_vm13 = vcmask 130048  }
  0x2f   :  { %v456_v22 = vsub.s32 0, %v2557_v21  ;;  %v460_v23 = vsub.s32 1, %v2557_v21  ;;  %vm1608_vm14 = vcmask 1043456   ;;  %vm2245_vm15 = vmmov 0  }
  0x76   :  { %v248_v43 = vpop.permute.xlu1 %247 }
  0x7a   :  { %v244_v44 = vpop.permute.xlu0 %243  ;;  %v960_v45 = vpop.permute.xlu1 %959 }
  0x7b   :  { %v251_v46 = vsel %vm233_vm0, %v2315_v1, %v244_v44 }
  0x7e   :  { %v246_v47 = vpop.permute.xlu0 %245  ;;  %v978_v48 = vpop.permute.xlu1 %977 }
  0x7f   :  { %v253_v49 = vsel %vm236_vm1, %v251_v46, %v246_v47 }
  0x80   :  { %v255_v50 = vsel %vm239_vm2, %v253_v49, %v248_v43 }
  0x81   :  { %439 = vmatmul.mubr.bf16.vlgmr.msra.gmra.mrb[0].mxu1 %v255_v50 }
  0x82   :  { %1005 = vmatpush1.bf16.msra.mxu1 %v2344_v16  ;;  %v969_v51 = vpop.permute.xlu0 %968  ;;  %v990_v52 = vpop.permute.xlu1 %989  ;;  %1849 = vmatprep.mubr.msk.bf16.mxu1 %vm233_vm0, %v979_v29 }
  0x83   :  { %1006 = vmatprep.subr.bf16.mxu1 %v2349_v17 }
  0x86   :  { %1007 = vmatpush1.bf16.msra.mxu1 %v2362_v24  ;;  %v988_v53 = vpop.permute.xlu0 %987  ;;  %v992_v55 = vpop.permute.xlu1 %991 }
  0x87   :  { %v995_v54 = vsel %vm233_vm0, %v2325_v7, %v988_v53  ;;  %1008 = vmatprep.subr.bf16.mxu1 %v2369_v25 }
  0x88   :  { %v997_v56 = vsel %vm236_vm1, %v995_v54, %v990_v52 }
  0x89   :  { %v999_v57 = vsel %vm239_vm2, %v997_v56, %v992_v55  ;;  %v2086_v55 = vld [vmem:[%s2976_s3] ss:$8 sps:$4 sm:$0xff]   ;;  %v2088_v56 = vld [vmem:[%s2976_s3 + $0x4] ss:$8 sps:$4 sm:$0xff]  }
  0x8a   :  { %1009 = vmatpush1.bf16.msra.mxu1 %v2380_v27  ;;  %v213_v58 = vpop.permute.xlu0 %212  ;;  %v231_v60 = vpop.permute.xlu1 %230  ;;  %814 = vmatprep.subr.bf16.mxu0 %v2088_v56 }
  0x8b   :  { %1010 = vmatprep.subr.bf16.mxu1 %v2387_v28  ;;  %v235_v59 = vsel %vm233_vm0, %v2310_v0, %v213_v58  ;;  %v981_v0 = vsel %vm233_vm0, %v2330_v8, %v960_v45  ;;  %v2089_v58 = vld [vmem:[%s2976_s3 + $0x10] ss:$8 sps:$4 sm:$0xff]  }
  0x8c   :  { %v983_v1 = vsel %vm236_vm1, %v981_v0, %v969_v51  ;;  %v2098_v0 = vld [vmem:[%s2976_s3 + $0x40] ss:$8 sps:$4 sm:$0xff]  }
  0x8d   :  { %v985_v2 = vsel %vm239_vm2, %v983_v1, %v978_v48  ;;  %v2103_v1 = vld [vmem:[%s2976_s3 + $0x54] ss:$8 sps:$4 sm:$0xff]  }
  0x8e   :  { %1011 = vmatpush1.bf16.msra.mxu1 %v2397_v30  ;;  %v222_v61 = vpop.permute.xlu0 %221 }
  0x8f   :  { %v238_v62 = vsel %vm236_vm1, %v235_v59, %v222_v61  ;;  %1012 = vmatprep.subr.bf16.mxu1 %v2404_v31  ;;  %v2094_v59 = vld [vmem:[%s2976_s3 + $0x24] ss:$8 sps:$4 sm:$0xff]   ;;  %v2097_v61 = vld [vmem:[%s2976_s3 + $0x34] ss:$8 sps:$4 sm:$0xff]  }
  0x90   :  { %v241_v63 = vsel %vm239_vm2, %v238_v62, %v231_v60  ;;  %v2092_v60 = vld [vmem:[%s2976_s3 + $0x20] ss:$8 sps:$4 sm:$0xff]   ;;  %v2095_v62 = vld [vmem:[%s2976_s3 + $0x30] ss:$8 sps:$4 sm:$0xff]  }
  0x91   :  { %393 = vmatmul.mubr.bf16.vlgmr.msra.gmra.mrb[0].mxu0 %v241_v63  ;;  %v2100_v63 = vld [vmem:[%s2976_s3 + $0x44] ss:$8 sps:$4 sm:$0xff]  }
  0x92   :  { %1013 = vmatpush1.bf16.msra.mxu1 %v2414_v32  ;;  %815 = vmatpush1.bf16.msra.mxu0 %v2086_v55 }
  0x93   :  { %1014 = vmatprep.subr.bf16.mxu1 %v2419_v33 }
  0x96   :  { %1015 = vmatpush1.bf16.msra.mxu1 %v2431_v34 }
  0x97   :  { %1016 = vmatprep.subr.bf16.mxu1 %v2436_v35 }
  0x9a   :  { %1017 = vmatpush1.bf16.msra.mxu1 %v2446_v36 }
  0x9b   :  { %1018 = vmatprep.subr.bf16.mxu1 %v2451_v37 }
  0x9e   :  { %1019 = vmatpush1.bf16.msra.mxu1 %v2460_v38 }
  0x9f   :  { %1020 = vmatprep.subr.bf16.mxu1 %v2465_v39 }
  0xa2   :  { %1021 = vmatpush1.bf16.msra.mxu1 %v2474_v40 }
  0xa3   :  { %1022 = vmatprep.subr.bf16.mxu1 %v2479_v41 }
  0xa6   :  { %1023 = vmatpush1.bf16.msra.mxu1 %v2488_v42 }
  0xa7   :  { %1050 = vmatprep.subr.bf16.mxu1 %v2339_v15 }
  0xa9   :  { %1037 = vmatmul.mubr.bf16.vlgmr.msra.gmra.mrb[4].mxu1 %v985_v2  ;;  %v2101_v2 = vld [vmem:[%s2976_s3 + $0x50] ss:$8 sps:$4 sm:$0xff]  }
  0xaa   :  { %1051 = vmatpush1.bf16.msra.mxu1 %v2344_v16  ;;  %1850 = vmatprep.mubr.msk.bf16.mxu1 %vm233_vm0, %v993_v3  ;;  %v2106_v3 = vld [vmem:[%s2976_s3 + $0x64] ss:$8 sps:$4 sm:$0xff]  }
  0xab   :  { %1052 = vmatprep.subr.bf16.mxu1 %v2349_v17 }
  0xae   :  { %1053 = vmatpush1.bf16.msra.mxu1 %v2362_v24  ;;  %v68_v24 = vld [vmem:[%s2975_s2] sm:$0x3]  ;;  %s2236_s2 = smov 44  }
  0xaf   :  { %1054 = vmatprep.subr.bf16.mxu1 %v2369_v25  ;;  %v457_v25 = vrot.slane %v68_v24, %v456_v22  ;;  %v461_v26 = vrot.slane %v68_v24, %v460_v23 }
  0xb2   :  { %1055 = vmatpush1.bf16.msra.mxu1 %v2380_v27 }
  0xb3   :  { %1056 = vmatprep.subr.bf16.mxu1 %v2387_v28 }
  0xb6   :  { %1057 = vmatpush1.bf16.msra.mxu1 %v2397_v30 }
  0xb7   :  { %1058 = vmatprep.subr.bf16.mxu1 %v2404_v31 }
  0xba   :  { %1059 = vmatpush1.bf16.msra.mxu1 %v2414_v32 }
  0xbb   :  { %1060 = vmatprep.subr.bf16.mxu1 %v2419_v33 }
  0xbe   :  { %1061 = vmatpush1.bf16.msra.mxu1 %v2431_v34 }
  0xbf   :  { %1062 = vmatprep.subr.bf16.mxu1 %v2436_v35 }
  0xc2   :  { %1063 = vmatpush1.bf16.msra.mxu1 %v2446_v36 }
  0xc3   :  { %1064 = vmatprep.subr.bf16.mxu1 %v2451_v37 }
  0xc6   :  { %1065 = vmatpush1.bf16.msra.mxu1 %v2460_v38 }
  0xc7   :  { %1066 = vmatprep.subr.bf16.mxu1 %v2465_v39 }
  0xca   :  { %1067 = vmatpush1.bf16.msra.mxu1 %v2474_v40 }
  0xcb   :  { %1068 = vmatprep.subr.bf16.mxu1 %v2479_v41 }
  0xce   :  { %1069 = vmatpush1.bf16.msra.mxu1 %v2488_v42 }
  0xcf   :  { %1158 = vmatprep.subr.bf16.mxu1 %v2088_v56 }
  0xd1   :  { %1083 = vmatmul.mubr.bf16.vlgmr.msra.gmra.mrb[8].mxu1 %v999_v57  ;;  %v2091_v57 = vld [vmem:[%s2976_s3 + $0x14] ss:$8 sps:$4 sm:$0xff]  }
  0xd2   :  { %1159 = vmatpush1.bf16.msra.mxu1 %v2086_v55  ;;  %816 = vmatprep.subr.bf16.mxu0 %v2091_v57  ;;  %v2136_v55 = vld [vmem:[%s2976_s3 + $0x104] ss:$8 sps:$4 sm:$0xff]  }
  0xd3   :  { %1160 = vmatprep.subr.bf16.mxu1 %v2091_v57  ;;  %817 = vmatpush1.bf16.msra.mxu0 %v2089_v58 }
  0xd4   :  { %818 = vmatprep.subr.bf16.mxu0 %v2094_v59 }
  0xd6   :  { %1161 = vmatpush1.bf16.msra.mxu1 %v2089_v58 }
  0xd7   :  { %1162 = vmatprep.subr.bf16.mxu1 %v2094_v59  ;;  %819 = vmatpush1.bf16.msra.mxu0 %v2092_v60 }
  0xd8   :  { %820 = vmatprep.subr.bf16.mxu0 %v2097_v61 }
  0xda   :  { %1163 = vmatpush1.bf16.msra.mxu1 %v2092_v60 }
  0xdb   :  { %1164 = vmatprep.subr.bf16.mxu1 %v2097_v61  ;;  %821 = vmatpush1.bf16.msra.mxu0 %v2095_v62 }
  0xdc   :  { %822 = vmatprep.subr.bf16.mxu0 %v2100_v63 }
  0xde   :  { %1165 = vmatpush1.bf16.msra.mxu1 %v2095_v62 }
  0xdf   :  { %1166 = vmatprep.subr.bf16.mxu1 %v2100_v63  ;;  %823 = vmatpush1.bf16.msra.mxu0 %v2098_v0 }
  0xe0   :  { %824 = vmatprep.subr.bf16.mxu0 %v2103_v1 }
  0xe2   :  { %1167 = vmatpush1.bf16.msra.mxu1 %v2098_v0 }
  0xe3   :  { %1168 = vmatprep.subr.bf16.mxu1 %v2103_v1  ;;  %825 = vmatpush1.bf16.msra.mxu0 %v2101_v2 }
  0xe4   :  { %826 = vmatprep.subr.bf16.mxu0 %v2106_v3 }
  0xe6   :  { %1169 = vmatpush1.bf16.msra.mxu1 %v2101_v2 }
  0xe7   :  { %1170 = vmatprep.subr.bf16.mxu1 %v2106_v3 }
 0x154   :  { %v440_v4 = vpop.f32.mrb[0].mxu1 }
 0x155   :  { %v442_v5 = vpop.f32.mrb[1].mxu1 }
 0x156   :  { %v444_v6 = vpop.f32.mrb[2].mxu1 }
 0x157   :  { %v446_v7 = vpop.f32.mrb[3].mxu1 }
 0x164   :  { %v394_v8 = vpop.f32.mrb[0].mxu0 }
 0x165   :  { %v449_v9 = vmax.f32 %v394_v8, %v440_v4  ;;  %v396_v10 = vpop.f32.mrb[1].mxu0  ;;  %v2104_v4 = vld [vmem:[%s2976_s3 + $0x60] ss:$8 sps:$4 sm:$0xff]  }
 0x166   :  { %v450_v11 = vmax.f32 %v396_v10, %v442_v5  ;;  %v398_v12 = vpop.f32.mrb[2].mxu0  ;;  %v2109_v5 = vld [vmem:[%s2976_s3 + $0x74] ss:$8 sps:$4 sm:$0xff]   ;;  %1171 = vmatpush1.bf16.msra.mxu1 %v2104_v4  ;;  %827 = vmatpush1.bf16.msra.mxu0 %v2104_v4  ;;  %v2110_v8 = vld [vmem:[%s2976_s3 + $0x80] ss:$8 sps:$4 sm:$0xff]  }
 0x167   :  { %v451_v13 = vmax.f32 %v398_v12, %v444_v6  ;;  %v400_v14 = vpop.f32.mrb[3].mxu0  ;;  %v2570_v35 = vadd.f32 %v457_v25, %v449_v9  ;;  %v2107_v6 = vld [vmem:[%s2976_s3 + $0x70] ss:$8 sps:$4 sm:$0xff]   ;;  %1172 = vmatprep.subr.bf16.mxu1 %v2109_v5  ;;  %828 = vmatprep.subr.bf16.mxu0 %v2109_v5  ;;  %v2115_v9 = vld [vmem:[%s2976_s3 + $0x94] ss:$8 sps:$4 sm:$0xff]  }
 0x168   :  { %v452_v15 = vmax.f32 %v400_v14, %v446_v7  ;;  %v465_v36 = vadd.f32 %v461_v26, %v450_v11  ;;  %v2112_v7 = vld [vmem:[%s2976_s3 + $0x84] ss:$8 sps:$4 sm:$0xff]   ;;  %v2113_v10 = vld [vmem:[%s2976_s3 + $0x90] ss:$8 sps:$4 sm:$0xff]   ;;  %v2116_v12 = vld [vmem:[%s2976_s3 + $0xa0] ss:$8 sps:$4 sm:$0xff]  }
 0x169   :  { %v2575_v41 = vadd.f32 %v457_v25, %v451_v13  ;;  %v468_v46 = vmax.f32 %v2570_v35, 0.0  ;;  %v2118_v11 = vld [vmem:[%s2976_s3 + $0xa4] ss:$8 sps:$4 sm:$0xff]   ;;  %v2121_v13 = vld [vmem:[%s2976_s3 + $0xb4] ss:$8 sps:$4 sm:$0xff]  }
 0x16a   :  { %v467_v42 = vadd.f32 %v461_v26, %v452_v15  ;;  %v469_v47 = vmax.f32 %v465_v36, 0.0  ;;  %1173 = vmatpush1.bf16.msra.mxu1 %v2107_v6  ;;  %829 = vmatpush1.bf16.msra.mxu0 %v2107_v6  ;;  %v2119_v14 = vld [vmem:[%s2976_s3 + $0xb0] ss:$8 sps:$4 sm:$0xff]   ;;  %v2124_v15 = vld [vmem:[%s2976_s3 + $0xc4] ss:$8 sps:$4 sm:$0xff]  }
 0x16b   :  { %v470_v50 = vmax.f32 %v2575_v41, 0.0  ;;  %1174 = vmatprep.subr.bf16.mxu1 %v2112_v7  ;;  %830 = vmatprep.subr.bf16.mxu0 %v2112_v7 }
 0x16c   :  { %v471_v51 = vmax.f32 %v467_v42, 0.0  ;;  %v2007_v53 = vpack.i.bf16 %v469_v47, %v468_v46 }
 0x16e   :  { %v2017_v54 = vpack.i.bf16 %v471_v51, %v470_v50  ;;  %1175 = vmatpush1.bf16.msra.mxu1 %v2110_v8  ;;  %831 = vmatpush1.bf16.msra.mxu0 %v2110_v8 }
 0x16f   :  { %1176 = vmatprep.subr.bf16.mxu1 %v2115_v9  ;;  %832 = vmatprep.subr.bf16.mxu0 %v2115_v9  ;;  %v2134_v9 = vld [vmem:[%s2976_s3 + $0x100] ss:$8 sps:$4 sm:$0xff]  }
 0x172   :  { %1177 = vmatpush1.bf16.msra.mxu1 %v2113_v10  ;;  %833 = vmatpush1.bf16.msra.mxu0 %v2113_v10 }
 0x173   :  { %1178 = vmatprep.subr.bf16.mxu1 %v2118_v11  ;;  %834 = vmatprep.subr.bf16.mxu0 %v2118_v11  ;;  %v2139_v11 = vld [vmem:[%s2976_s3 + $0x114] ss:$8 sps:$4 sm:$0xff]  }
 0x176   :  { %1179 = vmatpush1.bf16.msra.mxu1 %v2116_v12  ;;  %835 = vmatpush1.bf16.msra.mxu0 %v2116_v12 }
 0x177   :  { %1180 = vmatprep.subr.bf16.mxu1 %v2121_v13  ;;  %836 = vmatprep.subr.bf16.mxu0 %v2121_v13 }
 0x17a   :  { %1181 = vmatpush1.bf16.msra.mxu1 %v2119_v14  ;;  %837 = vmatpush1.bf16.msra.mxu0 %v2119_v14 }
 0x17b   :  { %1182 = vmatprep.subr.bf16.mxu1 %v2124_v15  ;;  %838 = vmatprep.subr.bf16.mxu0 %v2124_v15 }
 0x17c   :  { %v1038_v16 = vpop.f32.mrb[4].mxu1 }
 0x17d   :  { %v1040_v17 = vpop.f32.mrb[5].mxu1 }
 0x17e   :  { %v1042_v18 = vpop.f32.mrb[6].mxu1 }
 0x17f   :  { %v1044_v19 = vpop.f32.mrb[7].mxu1 }
 0x1a4   :  { %v1084_v27 = vpop.f32.mrb[8].mxu1 }
 0x1a5   :  { %v1093_v28 = vmax.f32 %v1038_v16, %v1084_v27  ;;  %v1086_v29 = vpop.f32.mrb[9].mxu1  ;;  %v2122_v16 = vld [vmem:[%s2976_s3 + $0xc0] ss:$8 sps:$4 sm:$0xff]  }
 0x1a6   :  { %v1094_v30 = vmax.f32 %v1040_v17, %v1086_v29  ;;  %v1088_v31 = vpop.f32.mrb[10].mxu1  ;;  %v2127_v17 = vld [vmem:[%s2976_s3 + $0xd4] ss:$8 sps:$4 sm:$0xff]   ;;  %1183 = vmatpush1.bf16.msra.mxu1 %v2122_v16  ;;  %839 = vmatpush1.bf16.msra.mxu0 %v2122_v16  ;;  %v2128_v29 = vld [vmem:[%s2976_s3 + $0xe0] ss:$8 sps:$4 sm:$0xff]  }
 0x1a7   :  { %v2568_v32 = vadd.f32 %v1093_v28, %v457_v25  ;;  %v1095_v33 = vmax.f32 %v1042_v18, %v1088_v31  ;;  %v1090_v34 = vpop.f32.mrb[11].mxu1  ;;  %v2125_v18 = vld [vmem:[%s2976_s3 + $0xd0] ss:$8 sps:$4 sm:$0xff]   ;;  %1184 = vmatprep.subr.bf16.mxu1 %v2127_v17  ;;  %840 = vmatprep.subr.bf16.mxu0 %v2127_v17 }
 0x1a8   :  { %v1098_v37 = vadd.f32 %v1094_v30, %v461_v26  ;;  %v1096_v38 = vmax.f32 %v1044_v19, %v1090_v34  ;;  %v2130_v30 = vld [vmem:[%s2976_s3 + $0xe4] ss:$8 sps:$4 sm:$0xff]   ;;  %v2137_v17 = vld [vmem:[%s2976_s3 + $0x110] ss:$8 sps:$4 sm:$0xff]  }
 0x1a9   :  { %v1101_v39 = vmax.f32 %v2568_v32, 0.0  ;;  %v2573_v40 = vadd.f32 %v1095_v33, %v457_v25 }
 0x1aa   :  { %v1102_v43 = vmax.f32 %v1098_v37, 0.0  ;;  %v1100_v44 = vadd.f32 %v1096_v38, %v461_v26  ;;  %1185 = vmatpush1.bf16.msra.mxu1 %v2125_v18  ;;  %841 = vmatpush1.bf16.msra.mxu0 %v2125_v18 }
 0x1ab   :  { %v1103_v45 = vmax.f32 %v2573_v40, 0.0  ;;  %1186 = vmatprep.subr.bf16.mxu1 %v2130_v30  ;;  %842 = vmatprep.subr.bf16.mxu0 %v2130_v30  ;;  %v2149_v30 = vld [vmem:[%s2976_s3 + $0x150] ss:$8 sps:$4 sm:$0xff]  }
 0x1ac   :  { %v1104_v48 = vmax.f32 %v1100_v44, 0.0  ;;  %v2002_v49 = vpack.i.bf16 %v1102_v43, %v1101_v39 }
 0x1ae   :  { %2003 = vrot.lane.b32.xlu0 %v2002_v49, %s2236_s2  ;;  %v2012_v52 = vpack.i.bf16 %v1104_v48, %v1103_v45  ;;  %1187 = vmatpush1.bf16.msra.mxu1 %v2128_v29  ;;  %v2131_v48 = vld [vmem:[%s2976_s3 + $0xf0] ss:$8 sps:$4 sm:$0xff]   ;;  %v2133_v49 = vld [vmem:[%s2976_s3 + $0xf4] ss:$8 sps:$4 sm:$0xff]  }
 0x1af   :  { %843 = vmatpush1.bf16.msra.mxu0 %v2128_v29  ;;  %1188 = vmatprep.subr.bf16.mxu1 %v2133_v49  ;;  %v2151_v29 = vld [vmem:[%s2976_s3 + $0x154] ss:$8 sps:$4 sm:$0xff]  }
 0x1b0   :  { %2013 = vrot.lane.b32.xlu1 %v2012_v52, %s2236_s2  ;;  %844 = vmatprep.subr.bf16.mxu0 %v2133_v49 }
 0x1b2   :  { %2008 = vrot.lane.b32.xlu0 %v2007_v53, %s2236_s2  ;;  %1189 = vmatpush1.bf16.msra.mxu1 %v2131_v48 }
 0x1b3   :  { %845 = vmatpush1.bf16.msra.mxu0 %v2131_v48  ;;  %1201 = vmatprep.subr.bf16.mxu1 %v2136_v55 }
 0x1b4   :  { %2018 = vrot.lane.b32.xlu1 %v2017_v54, %s2236_s2  ;;  %857 = vmatprep.subr.bf16.mxu0 %v2136_v55 }
 0x220   :  { %v2004_v19 = vpop.permute.xlu0 %2003 }
 0x221   :  { %v2006_v20 = vunpack.i.h.bf16 %v2004_v19  ;;  %v2005_v24 = vunpack.i.l.bf16 %v2004_v19  ;;  %v2142_v19 = vld [vmem:[%s2976_s3 + $0x124] ss:$8 sps:$4 sm:$0xff]  }
 0x222   :  { %v2014_v25 = vpop.permute.xlu1 %2013 }
 0x223   :  { %v1117_v26 = vsel %vm484_vm3, %v2005_v24, %v2006_v20  ;;  %v2016_v27 = vunpack.i.h.bf16 %v2014_v25  ;;  %v2015_v28 = vunpack.i.l.bf16 %v2014_v25  ;;  %v2140_v24 = vld [vmem:[%s2976_s3 + $0x120] ss:$8 sps:$4 sm:$0xff]   ;;  %v2145_v25 = vld [vmem:[%s2976_s3 + $0x134] ss:$8 sps:$4 sm:$0xff]  }
 0x224   :  { %v2009_v31 = vpop.permute.xlu0 %2008  ;;  %v1121_v37 = vmax.f32 %v1101_v39, %v1117_v26  ;;  %v2143_v26 = vld [vmem:[%s2976_s3 + $0x130] ss:$8 sps:$4 sm:$0xff]  }
 0x225   :  { %v1118_v33 = vsel %vm484_vm3, %v2015_v28, %v2016_v27  ;;  %v2011_v34 = vunpack.i.h.bf16 %v2009_v31  ;;  %v2010_v36 = vunpack.i.l.bf16 %v2009_v31  ;;  %v2148_v27 = vld [vmem:[%s2976_s3 + $0x144] ss:$8 sps:$4 sm:$0xff]   ;;  %v2146_v28 = vld [vmem:[%s2976_s3 + $0x140] ss:$8 sps:$4 sm:$0xff]  }
 0x226   :  { %v1122_v38 = vmax.f32 %v1103_v45, %v1118_v33  ;;  %v2019_v42 = vpop.permute.xlu1 %2018  ;;  %v2154_v31 = vld [vmem:[%s2976_s3 + $0x164] ss:$8 sps:$4 sm:$0xff]   ;;  %v2152_v33 = vld [vmem:[%s2976_s3 + $0x160] ss:$8 sps:$4 sm:$0xff]  }
 0x227   :  { %v485_v43 = vsel %vm484_vm3, %v2010_v36, %v2011_v34  ;;  %v2021_v44 = vunpack.i.h.bf16 %v2019_v42  ;;  %v2020_v47 = vunpack.i.l.bf16 %v2019_v42  ;;  %v2157_v34 = vld [vmem:[%s2976_s3 + $0x174] ss:$8 sps:$4 sm:$0xff]   ;;  %v2155_v36 = vld [vmem:[%s2976_s3 + $0x170] ss:$8 sps:$4 sm:$0xff]  }
 0x228   :  { %v1123_v32 = vpack.c.bf16 %v1122_v38, %v1121_v37  ;;  %v489_v40 = vmax.f32 %v468_v46, %v485_v43  ;;  %v2160_v37 = vld [vmem:[%s2976_s3 + $0x184] ss:$8 sps:$4 sm:$0xff]   ;;  %v2158_v38 = vld [vmem:[%s2976_s3 + $0x180] ss:$8 sps:$4 sm:$0xff]   ;;  %v2163_v42 = vld [vmem:[%s2976_s3 + $0x194] ss:$8 sps:$4 sm:$0xff]  }
 0x229   :  { %v486_v39 = vsel %vm484_vm3, %v2020_v47, %v2021_v44  ;;  %v121_v43 = vld [vmem:[%s2976_s3 + $0x1a0] sm:$0x33]  ;;  %v2161_v44 = vld [vmem:[%s2976_s3 + $0x190] ss:$8 sps:$4 sm:$0xff]  }
 0x22a   :  { %v490_v45 = vmax.f32 %v470_v50, %v486_v39  ;;  %v1125_v51 = vshrl.u32 %v1123_v32, 16  ;;  %v1127_v52 = vshll.u32 %v1123_v32, 16  ;;  %v1134_v60 = vrot.slane %v1123_v32, 1 }
 0x22b   :  { %v1142_v1 = vrot.slane %v1123_v32, 2  ;;  %v1844_v47 = vcombine.high %v121_v43, %v121_v43  ;;  %v1843_v48 = vcombine.low %v121_v43, %v121_v43  ;;  %v2181_v43 = vld [vmem:[%s2978_s5 + $0x38] sm:$0xff]  }
 0x22c   :  { %v491_v53 = vpack.c.bf16 %v490_v45, %v489_v40  ;;  %v1129_v54 = vrot.slane %v1127_v52, 1  ;;  %v1137_v58 = vrot.slane %v1125_v51, 1  ;;  %v1138_v59 = vrot.slane %v1127_v52, 2  ;;  %v122_v40 = vld [vmem:[%s2977_s4] sm:$0x3]  ;;  %s2241_s4 = smov 48  }
 0x22d   :  { %v809_v49 = vsel %vm807_vm8, %v1843_v48, 0  ;;  %v532_v45 = vrot.slane %v122_v40, %v456_v22 }
 0x22e   :  { %v1130_v56 = vor.u32 %v1129_v54, %v1125_v51  ;;  %v495_v57 = vshll.u32 %v491_v53, 16  ;;  %v493_v35 = vshrl.u32 %v491_v53, 16  ;;  %v1139_v50 = vor.u32 %v1138_v59, %v1137_v58 }
 0x22f   :  { %v502_v61 = vrot.slane %v491_v53, 1  ;;  %v510_v2 = vrot.slane %v491_v53, 2  ;;  %v536_v51 = vrot.slane %v122_v40, %v460_v23 }
 0x230   :  { %1131 = vrot.lane.b32.xlu0 %v1130_v56, %s2237_s19  ;;  %v497_v41 = vrot.slane %v495_v57, 1  ;;  %v505_v62 = vrot.slane %v493_v35, 1  ;;  %v506_v63 = vrot.slane %v495_v57, 2 }
 0x232   :  { %v498_v46 = vor.u32 %v497_v41, %v493_v35  ;;  %v507_v0 = vor.u32 %v506_v63, %v505_v62 }
 0x234   :  { %499 = vrot.lane.b32.xlu1 %v498_v46, %s2237_s19  ;;  %1140 = vrot.lane.b32.xlu0 %v1139_v50, %s2238_s20 }
 0x238   :  { %1135 = vrot.lane.b32.xlu1 %v1134_v60, %s2239_s21  ;;  %503 = vrot.lane.b32.xlu0 %v502_v61, %s2239_s21 }
 0x23c   :  { %508 = vrot.lane.b32.xlu1 %v507_v0, %s2238_s20  ;;  %1143 = vrot.lane.b32.xlu0 %v1142_v1, %s2240_s22  ;;  %v2166_v1 = vld [vmem:[%s2978_s5 + $0x40] sm:$0xff]  }
 0x240   :  { %511 = vrot.lane.b32.xlu1 %v510_v2, %s2240_s22  ;;  %v2167_v2 = vld [vmem:[%s2978_s5] sm:$0xff]  }
 0x2a2   :  { %v1132_v3 = vpop.permute.xlu0 %1131 }
 0x2a3   :  { %v1146_v12 = vsel %vm513_vm6, %v1123_v32, %v1132_v3 }
 0x2a6   :  { %v500_v4 = vpop.permute.xlu1 %499  ;;  %v2701_v5 = vpop.permute.xlu0 %1140 }
 0x2a7   :  { %v515_v18 = vsel %vm513_vm6, %v491_v53, %v500_v4 }
 0x2aa   :  { %v1136_v6 = vpop.permute.xlu1 %1135  ;;  %v504_v7 = vpop.permute.xlu0 %503 }
 0x2ab   :  { %v1149_v8 = vsel %vm517_vm4, %v1132_v3, %v1136_v6  ;;  %v519_v13 = vsel %vm517_vm4, %v500_v4, %v504_v7  ;;  %v2168_v3 = vld [vmem:[%s2978_s5 + $0x48] sm:$0xff]   ;;  %v2171_v6 = vld [vmem:[%s2978_s5 + $0x10] sm:$0xff]   ;;  %v2172_v7 = vld [vmem:[%s2978_s5 + $0x58] sm:$0xff]  }
 0x2ac   :  { %v1151_v10 = vsel %vm520_vm5, %v1149_v8, %v2701_v5  ;;  %v2169_v4 = vld [vmem:[%s2978_s5 + $0x8] sm:$0xff]   ;;  %v2173_v8 = vld [vmem:[%s2978_s5 + $0x18] sm:$0xff]  }
 0x2ad   :  { %1190 = vmatprep.mubr.bf16.mxu1 %v1151_v10  ;;  %v2175_v10 = vld [vmem:[%s2978_s5 + $0x20] sm:$0xff]  }
 0x2ae   :  { %v2712_v14 = vpop.permute.xlu1 %508  ;;  %1191 = vmatmul.mubr.bf16.vlgmr.msra.gmra.mrb[12].mxu1 %v1146_v12  ;;  %v2714_v15 = vpop.permute.xlu0 %1143  ;;  %v2177_v12 = vld [vmem:[%s2978_s5 + $0x28] sm:$0xff]  }
 0x2af   :  { %1202 = vmatpush1.bf16.msra.mxu1 %v2134_v9  ;;  %1852 = vmatprep.mubr.msk.bf16.mxu1 %vm804_vm7, %v2714_v15  ;;  %v522_v16 = vsel %vm520_vm5, %v519_v13, %v2712_v14  ;;  %v1154_v32 = vsel %vm524_vm9, %v2701_v5, %v2714_v15  ;;  %v2170_v5 = vld [vmem:[%s2978_s5 + $0x50] sm:$0xff]  }
 0x2b0   :  { %846 = vmatprep.mubr.bf16.mxu0 %v522_v16  ;;  %1203 = vmatprep.subr.bf16.mxu1 %v2139_v11 }
 0x2b1   :  { %847 = vmatmul.mubr.bf16.vlgmr.msra.gmra.mrb[4].mxu0 %v515_v18 }
 0x2b2   :  { %858 = vmatpush1.bf16.msra.mxu0 %v2134_v9  ;;  %v2727_v20 = vpop.permute.xlu1 %511  ;;  %v2174_v9 = vld [vmem:[%s2978_s5 + $0x60] sm:$0xff]  }
 0x2b3   :  { %1204 = vmatpush1.bf16.msra.mxu1 %v2137_v17  ;;  %1846 = vmatprep.mubr.msk.bf16.mxu0 %vm804_vm7, %v2727_v20  ;;  %v526_v39 = vsel %vm524_vm9, %v2712_v14, %v2727_v20 }
 0x2b4   :  { %859 = vmatprep.subr.bf16.mxu0 %v2139_v11  ;;  %1205 = vmatprep.subr.bf16.mxu1 %v2142_v19  ;;  %v2176_v11 = vld [vmem:[%s2978_s5 + $0x68] sm:$0xff]  }
 0x2b6   :  { %860 = vmatpush1.bf16.msra.mxu0 %v2137_v17 }
 0x2b7   :  { %1206 = vmatpush1.bf16.msra.mxu1 %v2140_v24  ;;  %861 = vmatprep.subr.bf16.mxu0 %v2142_v19 }
 0x2b8   :  { %1207 = vmatprep.subr.bf16.mxu1 %v2145_v25 }
 0x2ba   :  { %862 = vmatpush1.bf16.msra.mxu0 %v2140_v24 }
 0x2bb   :  { %1208 = vmatpush1.bf16.msra.mxu1 %v2143_v26  ;;  %863 = vmatprep.subr.bf16.mxu0 %v2145_v25 }
 0x2bc   :  { %1209 = vmatprep.subr.bf16.mxu1 %v2148_v27 }
 0x2be   :  { %864 = vmatpush1.bf16.msra.mxu0 %v2143_v26 }
 0x2bf   :  { %1210 = vmatpush1.bf16.msra.mxu1 %v2146_v28  ;;  %865 = vmatprep.subr.bf16.mxu0 %v2148_v27  ;;  %v2178_v27 = vld [vmem:[%s2978_s5 + $0x70] sm:$0xff]  }
 0x2c0   :  { %1211 = vmatprep.subr.bf16.mxu1 %v2151_v29 }
 0x2c2   :  { %866 = vmatpush1.bf16.msra.mxu0 %v2146_v28 }
 0x2c3   :  { %1212 = vmatpush1.bf16.msra.mxu1 %v2149_v30  ;;  %867 = vmatprep.subr.bf16.mxu0 %v2151_v29 }
 0x2c4   :  { %1213 = vmatprep.subr.bf16.mxu1 %v2154_v31 }
 0x2c6   :  { %868 = vmatpush1.bf16.msra.mxu0 %v2149_v30 }
 0x2c7   :  { %1214 = vmatpush1.bf16.msra.mxu1 %v2152_v33  ;;  %869 = vmatprep.subr.bf16.mxu0 %v2154_v31 }
 0x2c8   :  { %1215 = vmatprep.subr.bf16.mxu1 %v2157_v34 }
 0x2ca   :  { %870 = vmatpush1.bf16.msra.mxu0 %v2152_v33  ;;  %v2179_v33 = vld [vmem:[%s2978_s5 + $0x30] sm:$0xff]  }
 0x2cb   :  { %1216 = vmatpush1.bf16.msra.mxu1 %v2155_v36  ;;  %871 = vmatprep.subr.bf16.mxu0 %v2157_v34 }
 0x2cc   :  { %1217 = vmatprep.subr.bf16.mxu1 %v2160_v37 }
 0x2ce   :  { %872 = vmatpush1.bf16.msra.mxu0 %v2155_v36 }
 0x2cf   :  { %1218 = vmatpush1.bf16.msra.mxu1 %v2158_v38  ;;  %873 = vmatprep.subr.bf16.mxu0 %v2160_v37 }
 0x2d0   :  { %1219 = vmatprep.subr.bf16.mxu1 %v2163_v42 }
 0x2d2   :  { %874 = vmatpush1.bf16.msra.mxu0 %v2158_v38 }
 0x2d3   :  { %1220 = vmatpush1.bf16.msra.mxu1 %v2161_v44  ;;  %875 = vmatprep.subr.bf16.mxu0 %v2163_v42  ;;  %v2180_v42 = vld [vmem:[%s2978_s5 + $0x78] sm:$0xff]  }
 0x2d4   :  { %1851 = vmatprep.subr.msk.bf16.mxu1 %vm807_vm8, %v1844_v47 }
 0x2d6   :  { %876 = vmatpush1.bf16.msra.mxu0 %v2161_v44 }
 0x2d7   :  { %1222 = vmatpush1.bf16.msra.mxu1 %v809_v49  ;;  %1845 = vmatprep.subr.msk.bf16.mxu0 %vm807_vm8, %v1844_v47 }
 0x2da   :  { %878 = vmatpush1.bf16.msra.mxu0 %v809_v49  ;;  %1234 = vmatmul.mubr.bf16.vlgmr.msra.gmra.mrb[12].mxu1 %v1154_v32 }
 0x2db   :  { %1898 = vmatprep.subr.bf16.mxu0 %v2166_v1 }
 0x2dd   :  { %890 = vmatmul.mubr.bf16.vlgmr.msra.gmra.mrb[4].mxu0 %v526_v39 }
 0x2de   :  { %1899 = vmatpush3.bf16.msra.mxu0 %v2167_v2 }
 0x2df   :  { %1900 = vmatprep.subr.bf16.mxu0 %v2168_v3 }
 0x2e2   :  { %1901 = vmatpush3.bf16.msra.mxu0 %v2169_v4 }
 0x2e3   :  { %1902 = vmatprep.subr.bf16.mxu0 %v2170_v5 }
 0x2e6   :  { %1903 = vmatpush3.bf16.msra.mxu0 %v2171_v6 }
 0x2e7   :  { %1904 = vmatprep.subr.bf16.mxu0 %v2172_v7 }
 0x2ea   :  { %1905 = vmatpush3.bf16.msra.mxu0 %v2173_v8 }
 0x2eb   :  { %1906 = vmatprep.subr.bf16.mxu0 %v2174_v9 }
 0x2ee   :  { %1907 = vmatpush3.bf16.msra.mxu0 %v2175_v10 }
 0x2ef   :  { %1908 = vmatprep.subr.bf16.mxu0 %v2176_v11  ;;  %v2182_v11 = vld [vmem:[%s2978_s5 + $0x80] sm:$0xff]  }
 0x2f2   :  { %1909 = vmatpush3.bf16.msra.mxu0 %v2177_v12 }
 0x2f3   :  { %1910 = vmatprep.subr.bf16.mxu0 %v2178_v27 }
 0x2f6   :  { %1911 = vmatpush3.bf16.msra.mxu0 %v2179_v33  ;;  %v2191_v33 = vld [vmem:[%s2980_s7] sm:$0xff]  }
 0x2f7   :  { %1912 = vmatprep.subr.bf16.mxu0 %v2180_v42  ;;  %v2195_v42 = vld [vmem:[%s2980_s7 + $0x20] sm:$0xff]  }
 0x2fa   :  { %1913 = vmatpush3.bf16.msra.mxu0 %v2181_v43  ;;  %v2196_v43 = vld [vmem:[%s2980_s7 + $0x28] sm:$0xff]  }
 0x3ad   :  { %v1235_v52 = vpop.f32.mrb[12].mxu1 }
 0x3ae   :  { %v1976_v53 = vadd.f32 %v1235_v52, %v532_v45  ;;  %v1237_v54 = vpop.f32.mrb[13].mxu1 }
 0x3af   :  { %v1977_v55 = vadd.f32 %v1237_v54, %v536_v51  ;;  %v1239_v56 = vpop.f32.mrb[14].mxu1  ;;  %v2242_v54 = vmov 0  }
 0x3b0   :  { %v891_v57 = vpop.f32.mrb[4].mxu0  ;;  %v1241_v58 = vpop.f32.mrb[15].mxu1  ;;  %v2795_v35 = vadd.f32 %v1239_v56, %v532_v45  ;;  %1511 = vmatprep.subr.bf16.mxu0 %v2242_v54 }
 0x3b1   :  { %v2022_v59 = vpack.i.bf16 %v1977_v55, %v1976_v53  ;;  %v1972_v41 = vadd.f32 %v891_v57, %v532_v45  ;;  %v1979_v46 = vadd.f32 %v1241_v58, %v536_v51  ;;  %v893_v50 = vpop.f32.mrb[5].mxu0 }
 0x3b2   :  { %v1973_v60 = vadd.f32 %v893_v50, %v536_v51  ;;  %v895_v61 = vpop.f32.mrb[6].mxu0 }
 0x3b3   :  { %v897_v62 = vpop.f32.mrb[7].mxu0  ;;  %2023 = vrot.lane.b32.xlu0 %v2022_v59, %s2241_s4  ;;  %v2797_v22 = vadd.f32 %v895_v61, %v532_v45  ;;  %v2032_v63 = vpack.i.bf16 %v1979_v46, %v2795_v35 }
 0x3b4   :  { %v2027_v21 = vpack.i.bf16 %v1973_v60, %v1972_v41  ;;  %v1975_v23 = vadd.f32 %v897_v62, %v536_v51 }
 0x3b6   :  { %2028 = vrot.lane.b32.xlu1 %v2027_v21, %s2241_s4  ;;  %v2037_v0 = vpack.i.bf16 %v1975_v23, %v2797_v22 }
 0x3b7   :  { %2033 = vrot.lane.b32.xlu0 %v2032_v63, %s2241_s4 }
 0x3ba   :  { %2038 = vrot.lane.b32.xlu1 %v2037_v0, %s2241_s4 }
 0x425   :  { %v2024_v13 = vpop.permute.xlu0 %2023 }
 0x426   :  { %v2026_v14 = vunpack.i.h.bf16 %v2024_v13  ;;  %v2025_v15 = vunpack.i.l.bf16 %v2024_v13 }
 0x428   :  { %v1256_v16 = vsel %vm912_vm10, %v2025_v15, %v2026_v14  ;;  %v2029_v17 = vpop.permute.xlu1 %2028 }
 0x429   :  { %v1260_v18 = vmax.f32 %v1976_v53, %v1256_v16  ;;  %v2031_v19 = vunpack.i.h.bf16 %v2029_v17  ;;  %v2030_v20 = vunpack.i.l.bf16 %v2029_v17  ;;  %v2034_v24 = vpop.permute.xlu0 %2033  ;;  %v2183_v16 = vld [vmem:[%s2978_s5 + $0x88] sm:$0xff]   ;;  %v2184_v17 = vld [vmem:[%s2978_s5 + $0x90] sm:$0xff]  }
 0x42a   :  { %v2036_v29 = vunpack.i.h.bf16 %v2034_v24  ;;  %v2035_v30 = vunpack.i.l.bf16 %v2034_v24  ;;  %v2188_v24 = vld [vmem:[%s2978_s5 + $0xb0] sm:$0xff]  }
 0x42b   :  { %v1263_v25 = vrot.slane %v1260_v18, 1  ;;  %v913_v26 = vsel %vm912_vm10, %v2030_v20, %v2031_v19  ;;  %v2186_v19 = vld [vmem:[%s2978_s5 + $0xa0] sm:$0xff]   ;;  %v2187_v20 = vld [vmem:[%s2978_s5 + $0xa8] sm:$0xff]  }
 0x42c   :  { %v917_v28 = vmax.f32 %v1972_v41, %v913_v26  ;;  %v2039_v31 = vpop.permute.xlu1 %2038  ;;  %v1257_v47 = vsel %vm912_vm10, %v2035_v30, %v2036_v29  ;;  %v2189_v26 = vld [vmem:[%s2978_s5 + $0xb8] sm:$0xff]  }
 0x42d   :  { %v2041_v34 = vunpack.i.h.bf16 %v2039_v31  ;;  %v2040_v36 = vunpack.i.l.bf16 %v2039_v31  ;;  %v1265_v37 = vmax.f32 %v1260_v18, %v1263_v25  ;;  %v1261_v45 = vmax.f32 %v2795_v35, %v1257_v47  ;;  %v2185_v18 = vld [vmem:[%s2978_s5 + $0x98] sm:$0xff]  }
 0x42e   :  { %v920_v38 = vrot.slane %v917_v28, 1  ;;  %v2198_v47 = vld [vmem:[%s2980_s7 + $0x38] ss:$0 sps:$4 sm:$0xff]  }
 0x42f   :  { %v914_v48 = vsel %vm912_vm10, %v2040_v36, %v2041_v34  ;;  %v1275_v32 = vrot.slane %v1265_v37, 4  ;;  %v1271_v40 = vrot.slane %v1265_v37, 2  ;;  %v1279_v56 = vrot.slane %v1265_v37, 6  ;;  %v2192_v36 = vld [vmem:[%s2980_s7 + $0x8] sm:$0xff]  }
 0x430   :  { %v922_v44 = vmax.f32 %v917_v28, %v920_v38  ;;  %v918_v53 = vmax.f32 %v2797_v22, %v914_v48  ;;  %v1267_v58 = vrot.slane %v1261_v45, 1  ;;  %v2190_v28 = vld [vmem:[%s2978_s5 + $0xc0] sm:$0xff]   ;;  %v2244_v34 = vmov 0.0   ;;  %v2194_v38 = vld [vmem:[%s2980_s7 + $0x18] sm:$0xff]  }
 0x431   :  { %1956 = vmatprep.subr.bf16.mxu1 %v2244_v34  ;;  %v1610_v48 = vsel %vm1608_vm14, %v2198_v47, 0  ;;  %1968 = vmatprep.mubr.msk.bf16.mxu1 %vm2245_vm15, %v2244_v34 }
 0x432   :  { %v932_v49 = vrot.slane %v922_v44, 4  ;;  %v928_v39 = vrot.slane %v922_v44, 2  ;;  %v936_v55 = vrot.slane %v922_v44, 6  ;;  %v924_v57 = vrot.slane %v918_v53, 1 }
 0x433   :  { %v1269_v35 = vmax.f32 %v1261_v45, %v1267_v58 }
 0x434   :  { %v2047_v51 = vpack.i.bf16 %v932_v49, %v1275_v32  ;;  %v2042_v52 = vpack.i.bf16 %v928_v39, %v1271_v40  ;;  %v926_v59 = vmax.f32 %v918_v53, %v924_v57  ;;  %v2199_v49 = vld [vmem:[%s2982_s9] sm:$0xff]   ;;  %v2200_v32 = vld [vmem:[%s2982_s9 + $0x8] sm:$0xff]   ;;  %v2201_v39 = vld [vmem:[%s2982_s9 + $0x10] sm:$0xff]  }
 0x435   :  { %1957 = vmatpush3.bf16.msra.mxu1 %v2199_v49  ;;  %v2202_v40 = vld [vmem:[%s2982_s9 + $0x18] sm:$0xff]  }
 0x436   :  { %2048 = vrot.lane.b32.xlu1 %v2047_v51, %s2234_s12  ;;  %2043 = vrot.lane.b32.xlu0 %v2042_v52, %s2240_s22 }
 0x437   :  { %1958 = vmatprep.subr.bf16.mxu1 %v2244_v34 }
 0x439   :  { %1959 = vmatpush3.bf16.msra.mxu1 %v2200_v32 }
 0x43a   :  { %937 = vrot.lane.b32.xlu1 %v936_v55, %s2243_s16  ;;  %1280 = vrot.lane.b32.xlu0 %v1279_v56, %s2243_s16  ;;  %v1853_v55 = vld [vmem:[%s2979_s6] ss:$0 sm:$0xff] }
 0x43b   :  { %1960 = vmatprep.subr.bf16.mxu1 %v2244_v34 }
 0x43d   :  { %1961 = vmatpush3.bf16.msra.mxu1 %v2201_v39 }
 0x43e   :  { %941 = vrot.lane.b32.xlu1 %v926_v59, %s2235_s17  ;;  %1284 = vrot.lane.b32.xlu0 %v1269_v35, %s2235_s17 }
 0x43f   :  { %1962 = vmatprep.subr.bf16.mxu1 %v2244_v34 }
 0x441   :  { %1963 = vmatpush3.bf16.msra.mxu1 %v2202_v40 }
 0x442   :  { %1964 = vmatprep.subr.bf16.mxu1 %v2244_v34 }
 0x4a8   :  { %v2049_v41 = vpop.permute.xlu1 %2048  ;;  %v2044_v46 = vpop.permute.xlu0 %2043 }
 0x4a9   :  { %v2051_v50 = vunpack.i.h.bf16 %v2049_v41  ;;  %v2050_v60 = vunpack.i.l.bf16 %v2049_v41  ;;  %v2046_v61 = vunpack.i.h.bf16 %v2044_v46  ;;  %v2045_v62 = vunpack.i.l.bf16 %v2044_v46 }
 0x4ab   :  { %v1287_v21 = vsel %vm524_vm9, %v1265_v37, %v2045_v62  ;;  %v1288_v22 = vsel %vm233_vm0, %v2045_v62, %v2050_v60  ;;  %v945_v0 = vsel %vm233_vm0, %v2046_v61, %v2051_v50  ;;  %v944_v3 = vsel %vm524_vm9, %v922_v44, %v2046_v61  ;;  %v2193_v37 = vld [vmem:[%s2980_s7 + $0x10] sm:$0xff]   ;;  %v2203_v60 = vld [vmem:[%s2982_s9 + $0x20] sm:$0xff]   ;;  %v2204_v61 = vld [vmem:[%s2982_s9 + $0x28] ss:$0 sps:$4 sm:$0x33]  }
 0x4ac   :  { %v1294_v23 = vrot.slane %v1287_v21, 7  ;;  %v938_v63 = vpop.permute.xlu1 %937  ;;  %v1281_v1 = vpop.permute.xlu0 %1280  ;;  %v2197_v44 = vld [vmem:[%s2980_s7 + $0x30] sm:$0xff]   ;;  %vm1604_vm0 = vcmask 982016   ;;  %1965 = vmatpush3.bf16.msra.mxu1 %v2203_v60  ;;  %v1697_v62 = vsel %vm807_vm8, %v2204_v61, 0  ;;  %v1880_v21 = vld [vmem:[%s2981_s8] ss:$0 sm:$0xff] }
 0x4ad   :  { %v1289_v2 = vsel %vm946_vm11, %v1288_v22, %v1281_v1  ;;  %v947_v5 = vsel %vm946_vm11, %v945_v0, %v938_v63  ;;  %1966 = vmatprep.subr.bf16.mxu1 %v2244_v34  ;;  %s2246_s8 = smov [#allocation2]  }
 0x4ae   :  { %v1295_v4 = vrot.slane %v1289_v2, 7  ;;  %v1303_v6 = vsel %vm1302_vm12, %v944_v3, %v1294_v23  ;;  %s1759_s9 = sshll.u32 %s2246_s8, 4  ;;  %s1760_s9 = int_to_ptr.vmem [resolvable:$true] %s1759_s9 }
 0x4af   :  { %v1307_v13 = vpack.c.bf16 %v1303_v6, %v1303_v6  ;;  %p2214_p1 = scmp.lt.s32.totalorder %s1760_s9, %s1760_s9 }
 0x4b0   :  { %v1285_v7 = vpop.permute.xlu0 %1284  ;;  %v1304_v8 = vsel %vm1302_vm12, %v947_v5, %v1295_v4  ;;  %v942_v12 = vpop.permute.xlu1 %941  ;;  %1967 = vmatpush3.bf16.msra.mxu1 %v1697_v62  ;;  %v1890_v4 = vld [vmem:[%s2983_s10] ss:$0 sm:$0xff]  ;;  %s2209_s10 = scalar_lea.vmem %s1760_s9, 32 }
 0x4b1   :  { %v1297_v9 = vrot.slane %v1285_v7, 7  ;;  %v1308_v10 = vpack.c.bf16 %v1304_v8, %v1304_v8  ;;  %v1290_v25 = vsel %vm236_vm1, %v1281_v1, %v1285_v7  ;;  %v948_v29 = vsel %vm236_vm1, %v938_v63, %v942_v12  ;;  %p2210_p0 = scmp.ne.s32.totalorder %s1760_s9, %s2209_s10  ;;  %p2215_p2 = scmp.lt.s32.totalorder %s2209_s10, %s2209_s10 }
 0x4b2   :  { %v1296_v27 = vrot.slane %v1290_v25, 7  ;;  %vm1739_vm1 = vcmask 50176  }
 0x4b3   :  { %v1306_v14 = vsel %vm1302_vm12, %v942_v12, %v1297_v9  ;;  %1503 = vmatprep.mubr.bf16.mxu0 %v1308_v10  ;;  %p2216_p3 = por %p2215_p2, %p2214_p1 }
 0x4b4   :  { %v1310_v15 = vpack.c.bf16 %v1306_v14, %v1306_v14  ;;  %1504 = vmatmul.mubr.bf16.vlgmr.msra.gmra.mrb[8].mxu0 %v1307_v13  ;;  %v1305_v30 = vsel %vm1302_vm12, %v948_v29, %v1296_v27 }
 0x4b5   :  { %1512 = vmatpush1.bf16.msra.mxu0 %v2182_v11  ;;  %v1309_v31 = vpack.c.bf16 %v1305_v30, %v1305_v30  ;;  %p2217_p4 = pnand %p2216_p3, %p2210_p0 }
 0x4b6   :  { %1879 = vmatprep.mubr.msk.bf16.mxu0 %vm1467_vm13, %v1310_v15  ;;  %1513 = vmatprep.subr.bf16.mxu0 %v2242_v54 }
 0x4b9   :  { %1514 = vmatpush1.bf16.msra.mxu0 %v2183_v16 }
 0x4ba   :  { %1515 = vmatprep.subr.bf16.mxu0 %v2242_v54 }
 0x4bd   :  { %1516 = vmatpush1.bf16.msra.mxu0 %v2184_v17 }
 0x4be   :  { %1517 = vmatprep.subr.bf16.mxu0 %v2242_v54 }
 0x4c1   :  { %1518 = vmatpush1.bf16.msra.mxu0 %v2185_v18 }
 0x4c2   :  { %1519 = vmatprep.subr.bf16.mxu0 %v2242_v54 }
 0x4c5   :  { %1520 = vmatpush1.bf16.msra.mxu0 %v2186_v19 }
 0x4c6   :  { %1521 = vmatprep.subr.bf16.mxu0 %v2242_v54 }
 0x4c9   :  { %1522 = vmatpush1.bf16.msra.mxu0 %v2187_v20 }
 0x4ca   :  { %1523 = vmatprep.subr.bf16.mxu0 %v2242_v54 }
 0x4cd   :  { %1524 = vmatpush1.bf16.msra.mxu0 %v2188_v24 }
 0x4ce   :  { %1525 = vmatprep.subr.bf16.mxu0 %v2242_v54 }
 0x4d1   :  { %1526 = vmatpush1.bf16.msra.mxu0 %v2189_v26 }
 0x4d2   :  { %1527 = vmatprep.subr.bf16.mxu0 %v2242_v54 }
 0x4d5   :  { %1528 = vmatpush1.bf16.msra.mxu0 %v2190_v28 }
 0x4d6   :  { %1936 = vmatprep.subr.bf16.mxu0 %v2244_v34 }
 0x4d8   :  { %1544 = vmatmul.mubr.bf16.vlgmr.msra.gmra.mrb[12].mxu0 %v1309_v31 }
 0x4d9   :  { %1937 = vmatpush3.bf16.msra.mxu0 %v2191_v33  ;;  %1952 = vmatprep.mubr.msk.bf16.mxu0 %vm2245_vm15, %v2244_v34 }
 0x4da   :  { %1938 = vmatprep.subr.bf16.mxu0 %v2244_v34 }
 0x4dd   :  { %1939 = vmatpush3.bf16.msra.mxu0 %v2192_v36 }
 0x4de   :  { %1940 = vmatprep.subr.bf16.mxu0 %v2244_v34 }
 0x4e1   :  { %1941 = vmatpush3.bf16.msra.mxu0 %v2193_v37 }
 0x4e2   :  { %1942 = vmatprep.subr.bf16.mxu0 %v2244_v34 }
 0x4e5   :  { %1943 = vmatpush3.bf16.msra.mxu0 %v2194_v38 }
 0x4e6   :  { %1944 = vmatprep.subr.bf16.mxu0 %v2244_v34 }
 0x4e9   :  { %1945 = vmatpush3.bf16.msra.mxu0 %v2195_v42 }
 0x4ea   :  { %1946 = vmatprep.subr.bf16.mxu0 %v2244_v34 }
 0x4ed   :  { %1947 = vmatpush3.bf16.msra.mxu0 %v2196_v43 }
 0x4ee   :  { %1948 = vmatprep.subr.bf16.mxu0 %v2244_v34 }
 0x4f1   :  { %1949 = vmatpush3.bf16.msra.mxu0 %v2197_v44 }
 0x4f2   :  { %1950 = vmatprep.subr.bf16.mxu0 %v2244_v34 }
 0x4f5   :  { %1951 = vmatpush3.bf16.msra.mxu0 %v1610_v48 }
 0x587   :  { %v1914_v45 = vpop.f32.mrb[8].mxu0 }
 0x588   :  { %v1915_v51 = vpop.f32.mrb[9].mxu0 }
 0x589   :  { %v1916_v52 = vadd.f32 %v1915_v51, %v1914_v45  ;;  %v1917_v53 = vpop.f32.mrb[10].mxu0 }
 0x58a   :  { %v1918_v54 = vpop.f32.mrb[11].mxu0 }
 0x58b   :  { %v1506_v56 = vadd.f32 %v1916_v52, %v1853_v55 }
 0x5ab   :  { %v1545_v57 = vpop.f32.mrb[12].mxu0 }
 0x5ac   :  { %v1546_v58 = vadd.f32 %v1545_v57, %v1506_v56  ;;  %v1547_v59 = vpop.f32.mrb[13].mxu0 }
 0x5ad   :  { %v1548_v35 = vpop.f32.mrb[14].mxu0 }
 0x5ae   :  { %v1551_v41 = vmax.f32 %v1546_v58, 0.0  ;;  %v1549_v46 = vpop.f32.mrb[15].mxu0 }
 0x5b0   :  { %v1552_v50 = vpack.c.bf16 %v1551_v41, %v1551_v41 }
 0x5b2   :  { %1953 = vmatmul.mubr.msk.bf16.vlgmr.msra.gmra.mrb[16].mxu0 %vm1604_vm0, %v1552_v50 }
 0x685   :  { %v1646_v22 = vpop.f32.mrb[16].mxu0 }
 0x686   :  { %v1647_v23 = vadd.f32 %v1880_v21, %v1646_v22  ;;  %v1954_v63 = vpop.f32.mrb[17].mxu0 }
 0x687   :  { %v1649_v0 = vpop.f32.mrb[18].mxu0 }
 0x688   :  { %v1652_v1 = vmax.f32 %v1647_v23, 0.0  ;;  %v1955_v2 = vpop.f32.mrb[19].mxu0 }
 0x68a   :  { %v1653_v3 = vpack.c.bf16 %v1652_v1, %v1652_v1 }
 0x68c   :  { %1969 = vmatmul.mubr.msk.bf16.vlgmr.msra.gmra.mrb[16].mxu1 %vm513_vm6, %v1653_v3 }
 0x75f   :  { %v1733_v5 = vpop.f32.mrb[16].mxu1 }
 0x760   :  { %v1734_v6 = vadd.f32 %v1890_v4, %v1733_v5  ;;  %v1970_v7 = vpop.f32.mrb[17].mxu1 }
 0x761   :  { %v1736_v8 = vpop.f32.mrb[18].mxu1 }
 0x762   :  { %v1971_v9 = vpop.f32.mrb[19].mxu1  ;;  %v1740_v10 = vsel %vm1739_vm1, %v1734_v6, -inf }
 0x763   :  { %1741 = vmax.xlane.f32.xlu0 %v1740_v10 }
 0x7f0   :  { %v1742_v11 = vpop.xlane.xlu0 %1741 }
 0x7f1   :  { %v1743_v12 = vsub.f32 %v1734_v6, %v1742_v11 }
 0x7f3   :  { %v1744_v13 = vmul.f32 1.442695, %v1743_v12 }
 0x7f5   :  { %2205 = vpow2.f32 %v1744_v13 }
 0x7ff   :  { %v2206_v14 = vpop.eup %2205 }
 0x800   :  { %v1746_v15 = vsel %vm1739_vm1, %v2206_v14, 0.0 }
 0x801   :  { %1747 = vadd.xlane.f32.xlu1 %v1746_v15 }
 0x88e   :  { %v1748_v16 = vpop.xlane.xlu1 %1747 }
 0x88f   :  { %2207 = vlog2.f32 %v1748_v16 }
 0x899   :  { %v2208_v17 = vpop.eup %2207 }
 0x89a   :  { %v1750_v18 = vmul.f32 0.6931472, %v2208_v17 }
 0x89c   :  { %v1751_v19 = vsub.f32 %v1743_v12, %v1750_v18 }
 0x89e   :  { %1752 = vst.msk [vmem:[#allocation2] sm:$0x3] %vm1739_vm1, %v1751_v19 }
 0x89f   :  { %2220 = shalt.err (!%p2217_p4)
}
 0x8a0   :  { %s2221_s22 = scalar_lea.hbm %s2984_s11, 32 }
 0x8a1   :  { %p2222_p5 = scmp.ne.s32.totalorder %s2984_s11, %s2221_s22  ;;  %p2225_p6 = scmp.lt.u32.totalorder %s2221_s22, %s2984_s11 }
 0x8a3   :  { %p2227_p7 = pnand %p2225_p6, %p2222_p5 }
 0x8a5   :  { %2230 = shalt.err (!%p2227_p7)
}
 0x8a6   :  { %1762 = dma.vmem_to_hbm [thread:$0]  %s1760_s9, 32, %s2984_s11, [#allocation3]  }
 0x8a7   :  { %2231 = dma.done.wait [#allocation3], 32  }
 0x8a8   :  { %2232 = vsyncadd [#allocation3], 4294967264 }
 0x8a9   :  { %1766 = vsyncpa [#allocation3], 1 }

</bundles_post_ra>
